<compile_context>
chip_gen: v7x
topology: tpu7x:2x2x1
jax: 0.10.0
libtpu: 0.0.40
codegen_flags: <defaults>
</compile_context>

<pallas_src>
import functools

import numpy as np
import jax
import jax.numpy as jnp
from jax import lax
from jax.experimental import pallas as pl
from jax.experimental.pallas import tpu as pltpu


def _round_up(v, m):
    return ((v + m - 1) // m) * m


def readout_kernel(starts_ref, counts_ref,          # scalar-prefetch (SMEM)
                   x_hbm, w_ref, b_ref,             # inputs
                   sum_ref, max_ref,                 # outputs (VMEM blocks)
                   xbuf, sem,                        # scratch
                   *, n_max_pad):
    # starts_ref : [G_pad]        i32   first sorted-row of each graph
    # counts_ref : [G_pad]        i32   #nodes of each graph
    # x_hbm      : [N_pad, dim_p] f32   sorted node features, left in HBM
    # w_ref      : [1, dim_p]     f32   readout weight row
    # b_ref      : [1, 1]         f32   readout bias
    # sum_ref    : [gpb, dim_p]   f32   global_add_pool(score * x) block
    # max_ref    : [gpb, dim_p]   f32   global_max_pool(x) block
    # xbuf       : [2, win, dim_p] f32  double-buffered node window
    # sem        : DMA sems (2,)
    i = pl.program_id(0)
    nsteps = pl.num_programs(0)
    gpb = sum_ref.shape[0]
    win = xbuf.shape[1]

    def start_fetch(step, slot):
        row0 = starts_ref[step * gpb]
        pltpu.make_async_copy(x_hbm.at[pl.ds(row0, win)],
                              xbuf.at[slot], sem.at[slot]).start()

    # prime the pipeline (grid axis is sequential / "arbitrary")
    @pl.when(i == 0)
    def _():
        start_fetch(0, 0)

    # prefetch next graph-block while computing this one
    @pl.when(i + 1 < nsteps)
    def _():
        start_fetch(i + 1, (i + 1) % 2)

    slot = i % 2
    block_row0 = starts_ref[i * gpb]     # scalar read before the wait

    pltpu.make_async_copy(x_hbm.at[pl.ds(0, win)],
                          xbuf.at[slot], sem.at[slot]).wait()

    # hoisted loop constants (avoid re-broadcasting per iteration)
    w_row = w_ref[...]                                            # [1, dim_p]
    bias = b_ref[...]                                             # [1, 1]
    row_ids = lax.broadcasted_iota(jnp.int32, (n_max_pad, 1), 0)  # [n_max, 1]
    buf = xbuf.at[slot]                                           # [win, dim_p]

    def per_graph(g, carry):
        g_abs = i * gpb + g
        cnt = counts_ref[g_abs]
        local0 = starts_ref[g_abs] - block_row0
        # clamp keeps padded (count==0) graphs in-bounds; valid mask handles the rest
        local0 = jnp.minimum(local0, win - n_max_pad)
        xg = buf[pl.ds(local0, n_max_pad), :]                     # [n_max, dim_p]
        valid = row_ids < cnt                                     # [n_max, 1]

        # weighting: VPU multiply + lane reduce (no 1-wide MXU matmul)
        logits = jnp.sum(xg * w_row, axis=-1, keepdims=True) + bias
        # mask only the [n_max,1] score (rows past cnt belong to the next graph)
        score = jnp.where(valid, jax.nn.sigmoid(logits), 0.0)

        sum_ref[g, :] = jnp.sum(score * xg, axis=0)               # add pool
        max_ref[g, :] = jnp.max(jnp.where(valid, xg, -jnp.inf), axis=0)
        return carry

    lax.fori_loop(0, gpb, per_graph, 0, unroll=(gpb <= 8))


@functools.partial(
    jax.jit,
    static_argnames=("num_graphs", "max_nodes", "graphs_per_block",
                     "max_block_nodes"))
def readout_phase_forward(x, batch, w, b, *, num_graphs, max_nodes,
                          graphs_per_block=None, max_block_nodes=None):
    """ReadoutPhase.forward.  x: [N, dim] f32, batch: [N] int, w: [1, dim],
    b: [1].  Returns [num_graphs, 2*dim].

    max_block_nodes (optional, static): exact upper bound on the number of
    nodes in any block of `graphs_per_block` consecutive graphs; defaults to
    graphs_per_block * max_nodes (safe but reads more HBM)."""
    n, dim = x.shape
    dim_p = _round_up(dim, 128)
    n_max_pad = _round_up(max(max_nodes, 1), 8)

    # --- block sizing (review: ~2 MiB streamed window, >= 2 grid steps) -----
    if graphs_per_block is None:
        target_win_bytes = 2 * 2**20
        gpb = target_win_bytes // (n_max_pad * dim_p * 4)
        gpb = max(8, min(512, int(gpb)))
        gpb = min(gpb, max(8, _round_up(max(num_graphs, 1), 16) // 2))
        gpb = int(_round_up(gpb, 8))
    else:
        gpb = int(_round_up(int(graphs_per_block), 8))
    g_pad = _round_up(max(num_graphs, 1), gpb)

    if max_block_nodes is None:
        max_block_nodes = gpb * max(max_nodes, 1)
    win = _round_up(int(max_block_nodes), 8) + n_max_pad   # per-step node window

    # --- glue: ONE sort/gather, no scatter, no padded slab ------------------
    batch = batch.astype(jnp.int32)
    order = jnp.argsort(batch, stable=True)
    x_s = x[order].astype(jnp.float32)
    counts = jax.ops.segment_sum(jnp.ones((n,), jnp.int32), batch,
                                 num_segments=num_graphs)          # [G] i32
    counts_pad = jnp.pad(counts, (0, g_pad - num_graphs)).astype(jnp.int32)
    starts_pad = (jnp.cumsum(counts_pad) - counts_pad).astype(jnp.int32)

    n_pad_rows = _round_up(n + win, 8)        # any window read stays in-bounds
    x_s = jnp.pad(x_s, ((0, n_pad_rows - n), (0, dim_p - dim)))
    w2 = jnp.pad(w.astype(jnp.float32).reshape(1, dim),
                 ((0, 0), (0, dim_p - dim)))
    b2 = b.astype(jnp.float32).reshape(1, 1)

    # --- VMEM budget per generation (review: v7x 64 MiB, v5e/v6e 128 MiB) ---
    try:
        vmem_cap = int(pltpu.get_tpu_info().vmem_capacity_bytes)
    except Exception:
        vmem_cap = 64 * 2**20                  # conservative (v7x) fallback
    vmem_budget = (vmem_cap * 3) // 4
    vmem_need = (2 * win * dim_p * 4           # double-buffered node window
                 + 4 * gpb * dim_p * 4         # double-buffered sum/max blocks
                 + 2 * dim_p * 4 + 4096)       # w, b, slack
    vmem_limit = int(max(min(vmem_budget, max(8 * vmem_need, 16 * 2**20)),
                         vmem_need + (2 << 20)))

    nsteps = g_pad // gpb
    nodes_read = nsteps * win
    cost = pl.CostEstimate(
        flops=int(6 * nodes_read * dim_p),
        transcendentals=int(nodes_read),
        bytes_accessed=int(4 * (nodes_read * dim_p + 2 * g_pad * dim_p
                                + dim_p + 2 * g_pad)),
    )

    grid_spec = pltpu.PrefetchScalarGridSpec(
        num_scalar_prefetch=2,
        grid=(nsteps,),
        in_specs=[
            pl.BlockSpec(memory_space=pl.ANY),                    # x_s in HBM
            pl.BlockSpec((1, dim_p), lambda i, s, c: (0, 0)),     # w
            pl.BlockSpec((1, 1), lambda i, s, c: (0, 0)),         # b
        ],
        out_specs=[
            pl.BlockSpec((gpb, dim_p), lambda i, s, c: (i, 0)),   # sum pool
            pl.BlockSpec((gpb, dim_p), lambda i, s, c: (i, 0)),   # max pool
        ],
        scratch_shapes=[
            pltpu.VMEM((2, win, dim_p), jnp.float32),
            pltpu.SemaphoreType.DMA((2,)),
        ],
    )

    sum_out, max_out = pl.pallas_call(
        functools.partial(readout_kernel, n_max_pad=n_max_pad),
        grid_spec=grid_spec,
        out_shape=(
            jax.ShapeDtypeStruct((g_pad, dim_p), jnp.float32),
            jax.ShapeDtypeStruct((g_pad, dim_p), jnp.float32),
        ),
        compiler_params=pltpu.CompilerParams(
            # cross-step manual prefetch needs sequential grid order
            dimension_semantics=("arbitrary",),
            vmem_limit_bytes=vmem_limit),
        cost_estimate=cost,
    )(starts_pad, counts_pad, x_s, w2, b2)

    # lane-axis concat + un-padding: layout plumbing, done in the wrapper
    return jnp.concatenate(
        [sum_out[:num_graphs, :dim], max_out[:num_graphs, :dim]], axis=1)


def reference_forward(x, batch, w, b, num_graphs):
    """Plain-JAX reference of ReadoutPhase.forward."""
    score = jax.nn.sigmoid(x @ w.T + b)                           # [N, 1]
    out1 = jax.ops.segment_sum(score * x, batch, num_segments=num_graphs)
    out2 = jax.ops.segment_max(x, batch, num_segments=num_graphs)
    return jnp.concatenate([out1, out2], axis=1)


if __name__ == "__main__":
    key = jax.random.PRNGKey(0)
    k_x, k_w, k_perm = jax.random.split(key, 3)

    DIM = 128                                    # module default dim
    nodes_per_graph = np.array([5, 3, 9, 13, 7, 4, 6, 11, 8, 2], dtype=np.int32)
    G = int(nodes_per_graph.shape[0])            # 10 graphs
    N = int(nodes_per_graph.sum())               # 68 nodes
    MAX_NODES = int(nodes_per_graph.max())       # 13

    # choose a block size with >= 2 grid steps and the exact per-block node bound
    GPB = 8
    g_pad_demo = ((G + GPB - 1) // GPB) * GPB
    cnts = np.zeros(g_pad_demo, dtype=np.int64)
    cnts[:G] = nodes_per_graph
    MAX_BLOCK_NODES = int(cnts.reshape(-1, GPB).sum(axis=1).max())

    batch_np = np.repeat(np.arange(G, dtype=np.int32), nodes_per_graph)
    x = jax.random.normal(k_x, (N, DIM), dtype=jnp.float32)
    batch = jnp.asarray(batch_np)

    # shuffle node order to exercise the (unsorted-batch) sorting path
    perm = jax.random.permutation(k_perm, N)
    x = x[perm]
    batch = batch[perm]

    # ReadoutPhase params: xavier_uniform weight, zero bias
    limit = float(np.sqrt(6.0 / (DIM + 1)))
    w = jax.random.uniform(k_w, (1, DIM), jnp.float32, -limit, limit)
    b = jnp.zeros((1,), jnp.float32)

    out = readout_phase_forward(x, batch, w, b, num_graphs=G,
                                max_nodes=MAX_NODES, graphs_per_block=GPB,
                                max_block_nodes=MAX_BLOCK_NODES)
    jax.block_until_ready(out)

    ref = reference_forward(x, batch, w, b, G)
    assert out.shape == (G, 2 * DIM), out.shape
    assert jnp.allclose(out, ref, atol=1e-4, rtol=1e-4), (
        float(jnp.max(jnp.abs(out - ref))))

    print("KERNEL_OK")
</pallas_src>

<mosaic_0001>
module attributes {stable_mosaic.version = 11 : i64} {
  func.func @readout_kernel(%arg0: i32, %arg1: memref<16xi32, #tpu.memory_space<smem>>, %arg2: memref<16xi32, #tpu.memory_space<smem>>, %arg3: memref<152x128xf32, #tpu.memory_space<any>>, %arg4: memref<1x128xf32, #tpu.memory_space<vmem>>, %arg5: memref<1x1xf32, #tpu.memory_space<vmem>>, %arg6: memref<8x128xf32, #tpu.memory_space<vmem>>, %arg7: memref<8x128xf32, #tpu.memory_space<vmem>>, %arg8: memref<2x80x128xf32, #tpu.memory_space<vmem>>, %arg9: memref<2x!tpu.dma_semaphore, #tpu.memory_space<semaphore_mem>>) attributes {dimension_semantics = [#tpu.dimension_semantics<arbitrary>], iteration_bounds = array<i64: 2>, scalar_prefetch = 2 : i64, scratch_operands = 2 : i64, tpu.core_type = #tpu.core_type<tc>, window_params = [{}, {pipeline_mode = #tpu.pipeline_mode<synchronous>, transform_indices = @transform_1, window_bounds = array<i64: 1, 128>}, {pipeline_mode = #tpu.pipeline_mode<synchronous>, transform_indices = @transform_2, window_bounds = array<i64: 1, 1>}, {transform_indices = @transform_3, window_bounds = array<i64: 8, 128>}, {transform_indices = @transform_4, window_bounds = array<i64: 8, 128>}]} {
    %c0_i32 = arith.constant 0 : i32
    %0 = arith.cmpi eq, %arg0, %c0_i32 : i32
    %1 = arith.extui %0 : i1 to i32
    %c0_i32_0 = arith.constant 0 : i32
    %2 = arith.cmpi ne, %1, %c0_i32_0 : i32
    scf.if %2 {
      %c0_121 = arith.constant 0 : index
      %372 = memref.load %arg1[%c0_121] : memref<16xi32, #tpu.memory_space<smem>>
      %c0_i32_122 = arith.constant 0 : i32
      %c0_i32_123 = arith.constant 0 : i32
      %c0_i32_124 = arith.constant 0 : i32
      %373 = tpu.memref_slice %arg3[%372, %c0_i32_124] : memref<152x128xf32, #tpu.memory_space<any>> -> memref<80x128xf32, #tpu.memory_space<any>>
      %c0_i32_125 = arith.constant 0 : i32
      %c0_i32_126 = arith.constant 0 : i32
      %374 = tpu.memref_slice %arg8[%c0_i32_122, %c0_i32_125, %c0_i32_126] : memref<2x80x128xf32, #tpu.memory_space<vmem>> -> memref<1x80x128xf32, #tpu.memory_space<vmem>>
      %375 = tpu.memref_squeeze %374 : memref<1x80x128xf32, #tpu.memory_space<vmem>> -> memref<80x128xf32, #tpu.memory_space<vmem>>
      %376 = tpu.memref_slice %arg9[%c0_i32_123] : memref<2x!tpu.dma_semaphore, #tpu.memory_space<semaphore_mem>> -> memref<1x!tpu.dma_semaphore, #tpu.memory_space<semaphore_mem>>
      %377 = tpu.memref_squeeze %376 : memref<1x!tpu.dma_semaphore, #tpu.memory_space<semaphore_mem>> -> memref<!tpu.dma_semaphore, #tpu.memory_space<semaphore_mem>>
      tpu.enqueue_dma source(%373 : memref<80x128xf32, #tpu.memory_space<any>>) target(%375 : memref<80x128xf32, #tpu.memory_space<vmem>>) target_semaphore(%377 : memref<!tpu.dma_semaphore, #tpu.memory_space<semaphore_mem>>)
    } else {
    }
    %c1_i32 = arith.constant 1 : i32
    %3 = arith.addi %arg0, %c1_i32 : i32
    %c2_i32 = arith.constant 2 : i32
    %4 = arith.cmpi slt, %3, %c2_i32 : i32
    %5 = arith.extui %4 : i1 to i32
    %c0_i32_1 = arith.constant 0 : i32
    %6 = arith.cmpi ne, %5, %c0_i32_1 : i32
    scf.if %6 {
      %c1_i32_121 = arith.constant 1 : i32
      %372 = arith.addi %arg0, %c1_i32_121 : i32
      %c1_i32_122 = arith.constant 1 : i32
      %373 = arith.addi %arg0, %c1_i32_122 : i32
      %c2_i32_123 = arith.constant 2 : i32
      %c0_i32_124 = arith.constant 0 : i32
      %374 = arith.cmpi eq, %c2_i32_123, %c0_i32_124 : i32
      %c1_i32_125 = arith.constant 1 : i32
      %375 = arith.select %374, %c1_i32_125, %c2_i32_123 : i32
      %376 = arith.remsi %373, %375 : i32
      %c0_i32_126 = arith.constant 0 : i32
      %377 = arith.cmpi ne, %376, %c0_i32_126 : i32
      %c0_i32_127 = arith.constant 0 : i32
      %378 = arith.cmpi slt, %376, %c0_i32_127 : i32
      %c0_i32_128 = arith.constant 0 : i32
      %379 = arith.cmpi slt, %375, %c0_i32_128 : i32
      %380 = arith.xori %378, %379 : i1
      %381 = arith.andi %380, %377 : i1
      %382 = arith.addi %376, %375 : i32
      %383 = arith.select %381, %382, %376 : i32
      %c8_i32_129 = arith.constant 8 : i32
      %384 = arith.muli %372, %c8_i32_129 : i32
      %385 = arith.index_cast %384 : i32 to index
      %386 = memref.load %arg1[%385] : memref<16xi32, #tpu.memory_space<smem>>
      %c0_i32_130 = arith.constant 0 : i32
      %387 = tpu.memref_slice %arg3[%386, %c0_i32_130] : memref<152x128xf32, #tpu.memory_space<any>> -> memref<80x128xf32, #tpu.memory_space<any>>
      %c0_i32_131 = arith.constant 0 : i32
      %c0_i32_132 = arith.constant 0 : i32
      %388 = tpu.memref_slice %arg8[%383, %c0_i32_131, %c0_i32_132] : memref<2x80x128xf32, #tpu.memory_space<vmem>> -> memref<1x80x128xf32, #tpu.memory_space<vmem>>
      %389 = tpu.memref_squeeze %388 : memref<1x80x128xf32, #tpu.memory_space<vmem>> -> memref<80x128xf32, #tpu.memory_space<vmem>>
      %390 = tpu.memref_slice %arg9[%383] : memref<2x!tpu.dma_semaphore, #tpu.memory_space<semaphore_mem>> -> memref<1x!tpu.dma_semaphore, #tpu.memory_space<semaphore_mem>>
      %391 = tpu.memref_squeeze %390 : memref<1x!tpu.dma_semaphore, #tpu.memory_space<semaphore_mem>> -> memref<!tpu.dma_semaphore, #tpu.memory_space<semaphore_mem>>
      tpu.enqueue_dma source(%387 : memref<80x128xf32, #tpu.memory_space<any>>) target(%389 : memref<80x128xf32, #tpu.memory_space<vmem>>) target_semaphore(%391 : memref<!tpu.dma_semaphore, #tpu.memory_space<semaphore_mem>>)
    } else {
    }
    %c2_i32_2 = arith.constant 2 : i32
    %c0_i32_3 = arith.constant 0 : i32
    %7 = arith.cmpi eq, %c2_i32_2, %c0_i32_3 : i32
    %c1_i32_4 = arith.constant 1 : i32
    %8 = arith.select %7, %c1_i32_4, %c2_i32_2 : i32
    %9 = arith.remsi %arg0, %8 : i32
    %c0_i32_5 = arith.constant 0 : i32
    %10 = arith.cmpi ne, %9, %c0_i32_5 : i32
    %c0_i32_6 = arith.constant 0 : i32
    %11 = arith.cmpi slt, %9, %c0_i32_6 : i32
    %c0_i32_7 = arith.constant 0 : i32
    %12 = arith.cmpi slt, %8, %c0_i32_7 : i32
    %13 = arith.xori %11, %12 : i1
    %14 = arith.andi %13, %10 : i1
    %15 = arith.addi %9, %8 : i32
    %16 = arith.select %14, %15, %9 : i32
    %c8_i32 = arith.constant 8 : i32
    %17 = arith.muli %arg0, %c8_i32 : i32
    %18 = arith.index_cast %17 : i32 to index
    %19 = memref.load %arg1[%18] : memref<16xi32, #tpu.memory_space<smem>>
    %c0_i32_8 = arith.constant 0 : i32
    %c0_i32_9 = arith.constant 0 : i32
    %20 = tpu.memref_slice %arg3[%c0_i32_8, %c0_i32_9] : memref<152x128xf32, #tpu.memory_space<any>> -> memref<80x128xf32, #tpu.memory_space<any>>
    %c0_i32_10 = arith.constant 0 : i32
    %c0_i32_11 = arith.constant 0 : i32
    %21 = tpu.memref_slice %arg8[%16, %c0_i32_10, %c0_i32_11] : memref<2x80x128xf32, #tpu.memory_space<vmem>> -> memref<1x80x128xf32, #tpu.memory_space<vmem>>
    %22 = tpu.memref_squeeze %21 : memref<1x80x128xf32, #tpu.memory_space<vmem>> -> memref<80x128xf32, #tpu.memory_space<vmem>>
    %23 = tpu.memref_slice %arg9[%16] : memref<2x!tpu.dma_semaphore, #tpu.memory_space<semaphore_mem>> -> memref<1x!tpu.dma_semaphore, #tpu.memory_space<semaphore_mem>>
    %24 = tpu.memref_squeeze %23 : memref<1x!tpu.dma_semaphore, #tpu.memory_space<semaphore_mem>> -> memref<!tpu.dma_semaphore, #tpu.memory_space<semaphore_mem>>
    tpu.wait_dma2 semaphore(%24 : memref<!tpu.dma_semaphore, #tpu.memory_space<semaphore_mem>>) src(%20 : memref<80x128xf32, #tpu.memory_space<any>>) dst(%22 : memref<80x128xf32, #tpu.memory_space<vmem>>)
    %c0 = arith.constant 0 : index
    %c0_12 = arith.constant 0 : index
    %25 = vector.load %arg4[%c0, %c0_12] : memref<1x128xf32, #tpu.memory_space<vmem>>, vector<1x128xf32>
    %c0_13 = arith.constant 0 : index
    %c0_14 = arith.constant 0 : index
    %26 = vector.load %arg5[%c0_13, %c0_14] : memref<1x1xf32, #tpu.memory_space<vmem>>, vector<1x1xf32>
    %27 = tpu.iota {dimensions = array<i32: 0>} : vector<16x1xi32>
    %c0_i32_15 = arith.constant 0 : i32
    %c8_i32_16 = arith.constant 8 : i32
    %28 = arith.muli %arg0, %c8_i32_16 : i32
    %29 = arith.addi %28, %c0_i32_15 : i32
    %30 = arith.index_cast %29 : i32 to index
    %31 = memref.load %arg2[%30] : memref<16xi32, #tpu.memory_space<smem>>
    %32 = arith.index_cast %29 : i32 to index
    %33 = memref.load %arg1[%32] : memref<16xi32, #tpu.memory_space<smem>>
    %34 = arith.subi %33, %19 : i32
    %c64_i32 = arith.constant 64 : i32
    %35 = arith.minsi %34, %c64_i32 : i32
    %c0_i32_17 = arith.constant 0 : i32
    %c0_i32_18 = arith.constant 0 : i32
    %36 = tpu.memref_slice %arg8[%16, %c0_i32_17, %c0_i32_18] : memref<2x80x128xf32, #tpu.memory_space<vmem>> -> memref<1x80x128xf32, #tpu.memory_space<vmem>>
    %37 = tpu.memref_squeeze %36 : memref<1x80x128xf32, #tpu.memory_space<vmem>> -> memref<80x128xf32, #tpu.memory_space<vmem>>
    %38 = arith.index_cast %35 : i32 to index
    %c0_19 = arith.constant 0 : index
    %39 = vector.load %37[%38, %c0_19] : memref<80x128xf32, #tpu.memory_space<vmem>>, vector<16x128xf32>
    %40 = vector.broadcast %31 : i32 to vector<16x1xi32>
    %41 = arith.cmpi slt, %27, %40 : vector<16x1xi32>
    %42 = vector.broadcast %25 : vector<1x128xf32> to vector<16x128xf32>
    %43 = arith.mulf %39, %42 : vector<16x128xf32>
    %cst = arith.constant dense<0.000000e+00> : vector<16xf32>
    %44 = vector.multi_reduction <add>, %43, %cst [1] : vector<16x128xf32> to vector<16xf32>
    %45 = vector.shape_cast %44 : vector<16xf32> to vector<16x1xf32>
    %46 = vector.broadcast %26 : vector<1x1xf32> to vector<16x1xf32>
    %47 = arith.addf %45, %46 : vector<16x1xf32>
    %48 = arith.negf %47 : vector<16x1xf32>
    %49 = math.exp %48 : vector<16x1xf32>
    %cst_20 = arith.constant 1.000000e+00 : f32
    %50 = vector.broadcast %cst_20 : f32 to vector<16x1xf32>
    %51 = arith.addf %50, %49 : vector<16x1xf32>
    %52 = arith.divf %50, %51 : vector<16x1xf32>
    %cst_21 = arith.constant 0.000000e+00 : f32
    %53 = vector.broadcast %cst_21 : f32 to vector<16x1xf32>
    %54 = arith.select %41, %52, %53 : vector<16x1xi1>, vector<16x1xf32>
    %55 = vector.broadcast %54 : vector<16x1xf32> to vector<16x128xf32>
    %56 = arith.mulf %55, %39 : vector<16x128xf32>
    %cst_22 = arith.constant dense<0.000000e+00> : vector<128xf32>
    %57 = vector.multi_reduction <add>, %56, %cst_22 [0] : vector<16x128xf32> to vector<128xf32>
    %58 = arith.index_cast %c0_i32_15 : i32 to index
    %c0_23 = arith.constant 0 : index
    %59 = vector.load %arg6[%58, %c0_23] : memref<8x128xf32, #tpu.memory_space<vmem>>, vector<1x128xf32>
    %60 = vector.shape_cast %59 : vector<1x128xf32> to vector<128xf32>
    %61 = vector.shape_cast %57 : vector<128xf32> to vector<1x128xf32>
    tpu.vector_store %arg6[%58, %c0_23], %61 {strides = array<i32>} : memref<8x128xf32, #tpu.memory_space<vmem>>, vector<1x128xf32>,
    %cst_24 = arith.constant 0xFF800000 : f32
    %62 = vector.shape_cast %41 : vector<16x1xi1> to vector<16x1xi1>
    %63 = vector.broadcast %62 : vector<16x1xi1> to vector<16x128xi1>
    %64 = vector.broadcast %cst_24 : f32 to vector<16x128xf32>
    %65 = arith.select %63, %39, %64 : vector<16x128xi1>, vector<16x128xf32>
    %cst_25 = arith.constant dense<0xFF800000> : vector<128xf32>
    %66 = vector.multi_reduction <maximumf>, %65, %cst_25 [0] : vector<16x128xf32> to vector<128xf32>
    %67 = arith.index_cast %c0_i32_15 : i32 to index
    %c0_26 = arith.constant 0 : index
    %68 = vector.load %arg7[%67, %c0_26] : memref<8x128xf32, #tpu.memory_space<vmem>>, vector<1x128xf32>
    %69 = vector.shape_cast %68 : vector<1x128xf32> to vector<128xf32>
    %70 = vector.shape_cast %66 : vector<128xf32> to vector<1x128xf32>
    tpu.vector_store %arg7[%67, %c0_26], %70 {strides = array<i32>} : memref<8x128xf32, #tpu.memory_space<vmem>>, vector<1x128xf32>,
    %c1_i32_27 = arith.constant 1 : i32
    %c8_i32_28 = arith.constant 8 : i32
    %71 = arith.muli %arg0, %c8_i32_28 : i32
    %72 = arith.addi %71, %c1_i32_27 : i32
    %73 = arith.index_cast %72 : i32 to index
    %74 = memref.load %arg2[%73] : memref<16xi32, #tpu.memory_space<smem>>
    %75 = arith.index_cast %72 : i32 to index
    %76 = memref.load %arg1[%75] : memref<16xi32, #tpu.memory_space<smem>>
    %77 = arith.subi %76, %19 : i32
    %c64_i32_29 = arith.constant 64 : i32
    %78 = arith.minsi %77, %c64_i32_29 : i32
    %c0_i32_30 = arith.constant 0 : i32
    %c0_i32_31 = arith.constant 0 : i32
    %79 = tpu.memref_slice %arg8[%16, %c0_i32_30, %c0_i32_31] : memref<2x80x128xf32, #tpu.memory_space<vmem>> -> memref<1x80x128xf32, #tpu.memory_space<vmem>>
    %80 = tpu.memref_squeeze %79 : memref<1x80x128xf32, #tpu.memory_space<vmem>> -> memref<80x128xf32, #tpu.memory_space<vmem>>
    %81 = arith.index_cast %78 : i32 to index
    %c0_32 = arith.constant 0 : index
    %82 = vector.load %80[%81, %c0_32] : memref<80x128xf32, #tpu.memory_space<vmem>>, vector<16x128xf32>
    %83 = vector.broadcast %74 : i32 to vector<16x1xi32>
    %84 = arith.cmpi slt, %27, %83 : vector<16x1xi32>
    %85 = vector.broadcast %25 : vector<1x128xf32> to vector<16x128xf32>
    %86 = arith.mulf %82, %85 : vector<16x128xf32>
    %cst_33 = arith.constant dense<0.000000e+00> : vector<16xf32>
    %87 = vector.multi_reduction <add>, %86, %cst_33 [1] : vector<16x128xf32> to vector<16xf32>
    %88 = vector.shape_cast %87 : vector<16xf32> to vector<16x1xf32>
    %89 = vector.broadcast %26 : vector<1x1xf32> to vector<16x1xf32>
    %90 = arith.addf %88, %89 : vector<16x1xf32>
    %91 = arith.negf %90 : vector<16x1xf32>
    %92 = math.exp %91 : vector<16x1xf32>
    %cst_34 = arith.constant 1.000000e+00 : f32
    %93 = vector.broadcast %cst_34 : f32 to vector<16x1xf32>
    %94 = arith.addf %93, %92 : vector<16x1xf32>
    %95 = arith.divf %93, %94 : vector<16x1xf32>
    %cst_35 = arith.constant 0.000000e+00 : f32
    %96 = vector.broadcast %cst_35 : f32 to vector<16x1xf32>
    %97 = arith.select %84, %95, %96 : vector<16x1xi1>, vector<16x1xf32>
    %98 = vector.broadcast %97 : vector<16x1xf32> to vector<16x128xf32>
    %99 = arith.mulf %98, %82 : vector<16x128xf32>
    %cst_36 = arith.constant dense<0.000000e+00> : vector<128xf32>
    %100 = vector.multi_reduction <add>, %99, %cst_36 [0] : vector<16x128xf32> to vector<128xf32>
    %101 = arith.index_cast %c1_i32_27 : i32 to index
    %c0_37 = arith.constant 0 : index
    %102 = vector.load %arg6[%101, %c0_37] : memref<8x128xf32, #tpu.memory_space<vmem>>, vector<1x128xf32>
    %103 = vector.shape_cast %102 : vector<1x128xf32> to vector<128xf32>
    %104 = vector.shape_cast %100 : vector<128xf32> to vector<1x128xf32>
    tpu.vector_store %arg6[%101, %c0_37], %104 {strides = array<i32>} : memref<8x128xf32, #tpu.memory_space<vmem>>, vector<1x128xf32>,
    %cst_38 = arith.constant 0xFF800000 : f32
    %105 = vector.shape_cast %84 : vector<16x1xi1> to vector<16x1xi1>
    %106 = vector.broadcast %105 : vector<16x1xi1> to vector<16x128xi1>
    %107 = vector.broadcast %cst_38 : f32 to vector<16x128xf32>
    %108 = arith.select %106, %82, %107 : vector<16x128xi1>, vector<16x128xf32>
    %cst_39 = arith.constant dense<0xFF800000> : vector<128xf32>
    %109 = vector.multi_reduction <maximumf>, %108, %cst_39 [0] : vector<16x128xf32> to vector<128xf32>
    %110 = arith.index_cast %c1_i32_27 : i32 to index
    %c0_40 = arith.constant 0 : index
    %111 = vector.load %arg7[%110, %c0_40] : memref<8x128xf32, #tpu.memory_space<vmem>>, vector<1x128xf32>
    %112 = vector.shape_cast %111 : vector<1x128xf32> to vector<128xf32>
    %113 = vector.shape_cast %109 : vector<128xf32> to vector<1x128xf32>
    tpu.vector_store %arg7[%110, %c0_40], %113 {strides = array<i32>} : memref<8x128xf32, #tpu.memory_space<vmem>>, vector<1x128xf32>,
    %c2_i32_41 = arith.constant 2 : i32
    %c8_i32_42 = arith.constant 8 : i32
    %114 = arith.muli %arg0, %c8_i32_42 : i32
    %115 = arith.addi %114, %c2_i32_41 : i32
    %116 = arith.index_cast %115 : i32 to index
    %117 = memref.load %arg2[%116] : memref<16xi32, #tpu.memory_space<smem>>
    %118 = arith.index_cast %115 : i32 to index
    %119 = memref.load %arg1[%118] : memref<16xi32, #tpu.memory_space<smem>>
    %120 = arith.subi %119, %19 : i32
    %c64_i32_43 = arith.constant 64 : i32
    %121 = arith.minsi %120, %c64_i32_43 : i32
    %c0_i32_44 = arith.constant 0 : i32
    %c0_i32_45 = arith.constant 0 : i32
    %122 = tpu.memref_slice %arg8[%16, %c0_i32_44, %c0_i32_45] : memref<2x80x128xf32, #tpu.memory_space<vmem>> -> memref<1x80x128xf32, #tpu.memory_space<vmem>>
    %123 = tpu.memref_squeeze %122 : memref<1x80x128xf32, #tpu.memory_space<vmem>> -> memref<80x128xf32, #tpu.memory_space<vmem>>
    %124 = arith.index_cast %121 : i32 to index
    %c0_46 = arith.constant 0 : index
    %125 = vector.load %123[%124, %c0_46] : memref<80x128xf32, #tpu.memory_space<vmem>>, vector<16x128xf32>
    %126 = vector.broadcast %117 : i32 to vector<16x1xi32>
    %127 = arith.cmpi slt, %27, %126 : vector<16x1xi32>
    %128 = vector.broadcast %25 : vector<1x128xf32> to vector<16x128xf32>
    %129 = arith.mulf %125, %128 : vector<16x128xf32>
    %cst_47 = arith.constant dense<0.000000e+00> : vector<16xf32>
    %130 = vector.multi_reduction <add>, %129, %cst_47 [1] : vector<16x128xf32> to vector<16xf32>
    %131 = vector.shape_cast %130 : vector<16xf32> to vector<16x1xf32>
    %132 = vector.broadcast %26 : vector<1x1xf32> to vector<16x1xf32>
    %133 = arith.addf %131, %132 : vector<16x1xf32>
    %134 = arith.negf %133 : vector<16x1xf32>
    %135 = math.exp %134 : vector<16x1xf32>
    %cst_48 = arith.constant 1.000000e+00 : f32
    %136 = vector.broadcast %cst_48 : f32 to vector<16x1xf32>
    %137 = arith.addf %136, %135 : vector<16x1xf32>
    %138 = arith.divf %136, %137 : vector<16x1xf32>
    %cst_49 = arith.constant 0.000000e+00 : f32
    %139 = vector.broadcast %cst_49 : f32 to vector<16x1xf32>
    %140 = arith.select %127, %138, %139 : vector<16x1xi1>, vector<16x1xf32>
    %141 = vector.broadcast %140 : vector<16x1xf32> to vector<16x128xf32>
    %142 = arith.mulf %141, %125 : vector<16x128xf32>
    %cst_50 = arith.constant dense<0.000000e+00> : vector<128xf32>
    %143 = vector.multi_reduction <add>, %142, %cst_50 [0] : vector<16x128xf32> to vector<128xf32>
    %144 = arith.index_cast %c2_i32_41 : i32 to index
    %c0_51 = arith.constant 0 : index
    %145 = vector.load %arg6[%144, %c0_51] : memref<8x128xf32, #tpu.memory_space<vmem>>, vector<1x128xf32>
    %146 = vector.shape_cast %145 : vector<1x128xf32> to vector<128xf32>
    %147 = vector.shape_cast %143 : vector<128xf32> to vector<1x128xf32>
    tpu.vector_store %arg6[%144, %c0_51], %147 {strides = array<i32>} : memref<8x128xf32, #tpu.memory_space<vmem>>, vector<1x128xf32>,
    %cst_52 = arith.constant 0xFF800000 : f32
    %148 = vector.shape_cast %127 : vector<16x1xi1> to vector<16x1xi1>
    %149 = vector.broadcast %148 : vector<16x1xi1> to vector<16x128xi1>
    %150 = vector.broadcast %cst_52 : f32 to vector<16x128xf32>
    %151 = arith.select %149, %125, %150 : vector<16x128xi1>, vector<16x128xf32>
    %cst_53 = arith.constant dense<0xFF800000> : vector<128xf32>
    %152 = vector.multi_reduction <maximumf>, %151, %cst_53 [0] : vector<16x128xf32> to vector<128xf32>
    %153 = arith.index_cast %c2_i32_41 : i32 to index
    %c0_54 = arith.constant 0 : index
    %154 = vector.load %arg7[%153, %c0_54] : memref<8x128xf32, #tpu.memory_space<vmem>>, vector<1x128xf32>
    %155 = vector.shape_cast %154 : vector<1x128xf32> to vector<128xf32>
    %156 = vector.shape_cast %152 : vector<128xf32> to vector<1x128xf32>
    tpu.vector_store %arg7[%153, %c0_54], %156 {strides = array<i32>} : memref<8x128xf32, #tpu.memory_space<vmem>>, vector<1x128xf32>,
    %c3_i32 = arith.constant 3 : i32
    %c8_i32_55 = arith.constant 8 : i32
    %157 = arith.muli %arg0, %c8_i32_55 : i32
    %158 = arith.addi %157, %c3_i32 : i32
    %159 = arith.index_cast %158 : i32 to index
    %160 = memref.load %arg2[%159] : memref<16xi32, #tpu.memory_space<smem>>
    %161 = arith.index_cast %158 : i32 to index
    %162 = memref.load %arg1[%161] : memref<16xi32, #tpu.memory_space<smem>>
    %163 = arith.subi %162, %19 : i32
    %c64_i32_56 = arith.constant 64 : i32
    %164 = arith.minsi %163, %c64_i32_56 : i32
    %c0_i32_57 = arith.constant 0 : i32
    %c0_i32_58 = arith.constant 0 : i32
    %165 = tpu.memref_slice %arg8[%16, %c0_i32_57, %c0_i32_58] : memref<2x80x128xf32, #tpu.memory_space<vmem>> -> memref<1x80x128xf32, #tpu.memory_space<vmem>>
    %166 = tpu.memref_squeeze %165 : memref<1x80x128xf32, #tpu.memory_space<vmem>> -> memref<80x128xf32, #tpu.memory_space<vmem>>
    %167 = arith.index_cast %164 : i32 to index
    %c0_59 = arith.constant 0 : index
    %168 = vector.load %166[%167, %c0_59] : memref<80x128xf32, #tpu.memory_space<vmem>>, vector<16x128xf32>
    %169 = vector.broadcast %160 : i32 to vector<16x1xi32>
    %170 = arith.cmpi slt, %27, %169 : vector<16x1xi32>
    %171 = vector.broadcast %25 : vector<1x128xf32> to vector<16x128xf32>
    %172 = arith.mulf %168, %171 : vector<16x128xf32>
    %cst_60 = arith.constant dense<0.000000e+00> : vector<16xf32>
    %173 = vector.multi_reduction <add>, %172, %cst_60 [1] : vector<16x128xf32> to vector<16xf32>
    %174 = vector.shape_cast %173 : vector<16xf32> to vector<16x1xf32>
    %175 = vector.broadcast %26 : vector<1x1xf32> to vector<16x1xf32>
    %176 = arith.addf %174, %175 : vector<16x1xf32>
    %177 = arith.negf %176 : vector<16x1xf32>
    %178 = math.exp %177 : vector<16x1xf32>
    %cst_61 = arith.constant 1.000000e+00 : f32
    %179 = vector.broadcast %cst_61 : f32 to vector<16x1xf32>
    %180 = arith.addf %179, %178 : vector<16x1xf32>
    %181 = arith.divf %179, %180 : vector<16x1xf32>
    %cst_62 = arith.constant 0.000000e+00 : f32
    %182 = vector.broadcast %cst_62 : f32 to vector<16x1xf32>
    %183 = arith.select %170, %181, %182 : vector<16x1xi1>, vector<16x1xf32>
    %184 = vector.broadcast %183 : vector<16x1xf32> to vector<16x128xf32>
    %185 = arith.mulf %184, %168 : vector<16x128xf32>
    %cst_63 = arith.constant dense<0.000000e+00> : vector<128xf32>
    %186 = vector.multi_reduction <add>, %185, %cst_63 [0] : vector<16x128xf32> to vector<128xf32>
    %187 = arith.index_cast %c3_i32 : i32 to index
    %c0_64 = arith.constant 0 : index
    %188 = vector.load %arg6[%187, %c0_64] : memref<8x128xf32, #tpu.memory_space<vmem>>, vector<1x128xf32>
    %189 = vector.shape_cast %188 : vector<1x128xf32> to vector<128xf32>
    %190 = vector.shape_cast %186 : vector<128xf32> to vector<1x128xf32>
    tpu.vector_store %arg6[%187, %c0_64], %190 {strides = array<i32>} : memref<8x128xf32, #tpu.memory_space<vmem>>, vector<1x128xf32>,
    %cst_65 = arith.constant 0xFF800000 : f32
    %191 = vector.shape_cast %170 : vector<16x1xi1> to vector<16x1xi1>
    %192 = vector.broadcast %191 : vector<16x1xi1> to vector<16x128xi1>
    %193 = vector.broadcast %cst_65 : f32 to vector<16x128xf32>
    %194 = arith.select %192, %168, %193 : vector<16x128xi1>, vector<16x128xf32>
    %cst_66 = arith.constant dense<0xFF800000> : vector<128xf32>
    %195 = vector.multi_reduction <maximumf>, %194, %cst_66 [0] : vector<16x128xf32> to vector<128xf32>
    %196 = arith.index_cast %c3_i32 : i32 to index
    %c0_67 = arith.constant 0 : index
    %197 = vector.load %arg7[%196, %c0_67] : memref<8x128xf32, #tpu.memory_space<vmem>>, vector<1x128xf32>
    %198 = vector.shape_cast %197 : vector<1x128xf32> to vector<128xf32>
    %199 = vector.shape_cast %195 : vector<128xf32> to vector<1x128xf32>
    tpu.vector_store %arg7[%196, %c0_67], %199 {strides = array<i32>} : memref<8x128xf32, #tpu.memory_space<vmem>>, vector<1x128xf32>,
    %c4_i32 = arith.constant 4 : i32
    %c8_i32_68 = arith.constant 8 : i32
    %200 = arith.muli %arg0, %c8_i32_68 : i32
    %201 = arith.addi %200, %c4_i32 : i32
    %202 = arith.index_cast %201 : i32 to index
    %203 = memref.load %arg2[%202] : memref<16xi32, #tpu.memory_space<smem>>
    %204 = arith.index_cast %201 : i32 to index
    %205 = memref.load %arg1[%204] : memref<16xi32, #tpu.memory_space<smem>>
    %206 = arith.subi %205, %19 : i32
    %c64_i32_69 = arith.constant 64 : i32
    %207 = arith.minsi %206, %c64_i32_69 : i32
    %c0_i32_70 = arith.constant 0 : i32
    %c0_i32_71 = arith.constant 0 : i32
    %208 = tpu.memref_slice %arg8[%16, %c0_i32_70, %c0_i32_71] : memref<2x80x128xf32, #tpu.memory_space<vmem>> -> memref<1x80x128xf32, #tpu.memory_space<vmem>>
    %209 = tpu.memref_squeeze %208 : memref<1x80x128xf32, #tpu.memory_space<vmem>> -> memref<80x128xf32, #tpu.memory_space<vmem>>
    %210 = arith.index_cast %207 : i32 to index
    %c0_72 = arith.constant 0 : index
    %211 = vector.load %209[%210, %c0_72] : memref<80x128xf32, #tpu.memory_space<vmem>>, vector<16x128xf32>
    %212 = vector.broadcast %203 : i32 to vector<16x1xi32>
    %213 = arith.cmpi slt, %27, %212 : vector<16x1xi32>
    %214 = vector.broadcast %25 : vector<1x128xf32> to vector<16x128xf32>
    %215 = arith.mulf %211, %214 : vector<16x128xf32>
    %cst_73 = arith.constant dense<0.000000e+00> : vector<16xf32>
    %216 = vector.multi_reduction <add>, %215, %cst_73 [1] : vector<16x128xf32> to vector<16xf32>
    %217 = vector.shape_cast %216 : vector<16xf32> to vector<16x1xf32>
    %218 = vector.broadcast %26 : vector<1x1xf32> to vector<16x1xf32>
    %219 = arith.addf %217, %218 : vector<16x1xf32>
    %220 = arith.negf %219 : vector<16x1xf32>
    %221 = math.exp %220 : vector<16x1xf32>
    %cst_74 = arith.constant 1.000000e+00 : f32
    %222 = vector.broadcast %cst_74 : f32 to vector<16x1xf32>
    %223 = arith.addf %222, %221 : vector<16x1xf32>
    %224 = arith.divf %222, %223 : vector<16x1xf32>
    %cst_75 = arith.constant 0.000000e+00 : f32
    %225 = vector.broadcast %cst_75 : f32 to vector<16x1xf32>
    %226 = arith.select %213, %224, %225 : vector<16x1xi1>, vector<16x1xf32>
    %227 = vector.broadcast %226 : vector<16x1xf32> to vector<16x128xf32>
    %228 = arith.mulf %227, %211 : vector<16x128xf32>
    %cst_76 = arith.constant dense<0.000000e+00> : vector<128xf32>
    %229 = vector.multi_reduction <add>, %228, %cst_76 [0] : vector<16x128xf32> to vector<128xf32>
    %230 = arith.index_cast %c4_i32 : i32 to index
    %c0_77 = arith.constant 0 : index
    %231 = vector.load %arg6[%230, %c0_77] : memref<8x128xf32, #tpu.memory_space<vmem>>, vector<1x128xf32>
    %232 = vector.shape_cast %231 : vector<1x128xf32> to vector<128xf32>
    %233 = vector.shape_cast %229 : vector<128xf32> to vector<1x128xf32>
    tpu.vector_store %arg6[%230, %c0_77], %233 {strides = array<i32>} : memref<8x128xf32, #tpu.memory_space<vmem>>, vector<1x128xf32>,
    %cst_78 = arith.constant 0xFF800000 : f32
    %234 = vector.shape_cast %213 : vector<16x1xi1> to vector<16x1xi1>
    %235 = vector.broadcast %234 : vector<16x1xi1> to vector<16x128xi1>
    %236 = vector.broadcast %cst_78 : f32 to vector<16x128xf32>
    %237 = arith.select %235, %211, %236 : vector<16x128xi1>, vector<16x128xf32>
    %cst_79 = arith.constant dense<0xFF800000> : vector<128xf32>
    %238 = vector.multi_reduction <maximumf>, %237, %cst_79 [0] : vector<16x128xf32> to vector<128xf32>
    %239 = arith.index_cast %c4_i32 : i32 to index
    %c0_80 = arith.constant 0 : index
    %240 = vector.load %arg7[%239, %c0_80] : memref<8x128xf32, #tpu.memory_space<vmem>>, vector<1x128xf32>
    %241 = vector.shape_cast %240 : vector<1x128xf32> to vector<128xf32>
    %242 = vector.shape_cast %238 : vector<128xf32> to vector<1x128xf32>
    tpu.vector_store %arg7[%239, %c0_80], %242 {strides = array<i32>} : memref<8x128xf32, #tpu.memory_space<vmem>>, vector<1x128xf32>,
    %c5_i32 = arith.constant 5 : i32
    %c8_i32_81 = arith.constant 8 : i32
    %243 = arith.muli %arg0, %c8_i32_81 : i32
    %244 = arith.addi %243, %c5_i32 : i32
    %245 = arith.index_cast %244 : i32 to index
    %246 = memref.load %arg2[%245] : memref<16xi32, #tpu.memory_space<smem>>
    %247 = arith.index_cast %244 : i32 to index
    %248 = memref.load %arg1[%247] : memref<16xi32, #tpu.memory_space<smem>>
    %249 = arith.subi %248, %19 : i32
    %c64_i32_82 = arith.constant 64 : i32
    %250 = arith.minsi %249, %c64_i32_82 : i32
    %c0_i32_83 = arith.constant 0 : i32
    %c0_i32_84 = arith.constant 0 : i32
    %251 = tpu.memref_slice %arg8[%16, %c0_i32_83, %c0_i32_84] : memref<2x80x128xf32, #tpu.memory_space<vmem>> -> memref<1x80x128xf32, #tpu.memory_space<vmem>>
    %252 = tpu.memref_squeeze %251 : memref<1x80x128xf32, #tpu.memory_space<vmem>> -> memref<80x128xf32, #tpu.memory_space<vmem>>
    %253 = arith.index_cast %250 : i32 to index
    %c0_85 = arith.constant 0 : index
    %254 = vector.load %252[%253, %c0_85] : memref<80x128xf32, #tpu.memory_space<vmem>>, vector<16x128xf32>
    %255 = vector.broadcast %246 : i32 to vector<16x1xi32>
    %256 = arith.cmpi slt, %27, %255 : vector<16x1xi32>
    %257 = vector.broadcast %25 : vector<1x128xf32> to vector<16x128xf32>
    %258 = arith.mulf %254, %257 : vector<16x128xf32>
    %cst_86 = arith.constant dense<0.000000e+00> : vector<16xf32>
    %259 = vector.multi_reduction <add>, %258, %cst_86 [1] : vector<16x128xf32> to vector<16xf32>
    %260 = vector.shape_cast %259 : vector<16xf32> to vector<16x1xf32>
    %261 = vector.broadcast %26 : vector<1x1xf32> to vector<16x1xf32>
    %262 = arith.addf %260, %261 : vector<16x1xf32>
    %263 = arith.negf %262 : vector<16x1xf32>
    %264 = math.exp %263 : vector<16x1xf32>
    %cst_87 = arith.constant 1.000000e+00 : f32
    %265 = vector.broadcast %cst_87 : f32 to vector<16x1xf32>
    %266 = arith.addf %265, %264 : vector<16x1xf32>
    %267 = arith.divf %265, %266 : vector<16x1xf32>
    %cst_88 = arith.constant 0.000000e+00 : f32
    %268 = vector.broadcast %cst_88 : f32 to vector<16x1xf32>
    %269 = arith.select %256, %267, %268 : vector<16x1xi1>, vector<16x1xf32>
    %270 = vector.broadcast %269 : vector<16x1xf32> to vector<16x128xf32>
    %271 = arith.mulf %270, %254 : vector<16x128xf32>
    %cst_89 = arith.constant dense<0.000000e+00> : vector<128xf32>
    %272 = vector.multi_reduction <add>, %271, %cst_89 [0] : vector<16x128xf32> to vector<128xf32>
    %273 = arith.index_cast %c5_i32 : i32 to index
    %c0_90 = arith.constant 0 : index
    %274 = vector.load %arg6[%273, %c0_90] : memref<8x128xf32, #tpu.memory_space<vmem>>, vector<1x128xf32>
    %275 = vector.shape_cast %274 : vector<1x128xf32> to vector<128xf32>
    %276 = vector.shape_cast %272 : vector<128xf32> to vector<1x128xf32>
    tpu.vector_store %arg6[%273, %c0_90], %276 {strides = array<i32>} : memref<8x128xf32, #tpu.memory_space<vmem>>, vector<1x128xf32>,
    %cst_91 = arith.constant 0xFF800000 : f32
    %277 = vector.shape_cast %256 : vector<16x1xi1> to vector<16x1xi1>
    %278 = vector.broadcast %277 : vector<16x1xi1> to vector<16x128xi1>
    %279 = vector.broadcast %cst_91 : f32 to vector<16x128xf32>
    %280 = arith.select %278, %254, %279 : vector<16x128xi1>, vector<16x128xf32>
    %cst_92 = arith.constant dense<0xFF800000> : vector<128xf32>
    %281 = vector.multi_reduction <maximumf>, %280, %cst_92 [0] : vector<16x128xf32> to vector<128xf32>
    %282 = arith.index_cast %c5_i32 : i32 to index
    %c0_93 = arith.constant 0 : index
    %283 = vector.load %arg7[%282, %c0_93] : memref<8x128xf32, #tpu.memory_space<vmem>>, vector<1x128xf32>
    %284 = vector.shape_cast %283 : vector<1x128xf32> to vector<128xf32>
    %285 = vector.shape_cast %281 : vector<128xf32> to vector<1x128xf32>
    tpu.vector_store %arg7[%282, %c0_93], %285 {strides = array<i32>} : memref<8x128xf32, #tpu.memory_space<vmem>>, vector<1x128xf32>,
    %c6_i32 = arith.constant 6 : i32
    %c8_i32_94 = arith.constant 8 : i32
    %286 = arith.muli %arg0, %c8_i32_94 : i32
    %287 = arith.addi %286, %c6_i32 : i32
    %288 = arith.index_cast %287 : i32 to index
    %289 = memref.load %arg2[%288] : memref<16xi32, #tpu.memory_space<smem>>
    %290 = arith.index_cast %287 : i32 to index
    %291 = memref.load %arg1[%290] : memref<16xi32, #tpu.memory_space<smem>>
    %292 = arith.subi %291, %19 : i32
    %c64_i32_95 = arith.constant 64 : i32
    %293 = arith.minsi %292, %c64_i32_95 : i32
    %c0_i32_96 = arith.constant 0 : i32
    %c0_i32_97 = arith.constant 0 : i32
    %294 = tpu.memref_slice %arg8[%16, %c0_i32_96, %c0_i32_97] : memref<2x80x128xf32, #tpu.memory_space<vmem>> -> memref<1x80x128xf32, #tpu.memory_space<vmem>>
    %295 = tpu.memref_squeeze %294 : memref<1x80x128xf32, #tpu.memory_space<vmem>> -> memref<80x128xf32, #tpu.memory_space<vmem>>
    %296 = arith.index_cast %293 : i32 to index
    %c0_98 = arith.constant 0 : index
    %297 = vector.load %295[%296, %c0_98] : memref<80x128xf32, #tpu.memory_space<vmem>>, vector<16x128xf32>
    %298 = vector.broadcast %289 : i32 to vector<16x1xi32>
    %299 = arith.cmpi slt, %27, %298 : vector<16x1xi32>
    %300 = vector.broadcast %25 : vector<1x128xf32> to vector<16x128xf32>
    %301 = arith.mulf %297, %300 : vector<16x128xf32>
    %cst_99 = arith.constant dense<0.000000e+00> : vector<16xf32>
    %302 = vector.multi_reduction <add>, %301, %cst_99 [1] : vector<16x128xf32> to vector<16xf32>
    %303 = vector.shape_cast %302 : vector<16xf32> to vector<16x1xf32>
    %304 = vector.broadcast %26 : vector<1x1xf32> to vector<16x1xf32>
    %305 = arith.addf %303, %304 : vector<16x1xf32>
    %306 = arith.negf %305 : vector<16x1xf32>
    %307 = math.exp %306 : vector<16x1xf32>
    %cst_100 = arith.constant 1.000000e+00 : f32
    %308 = vector.broadcast %cst_100 : f32 to vector<16x1xf32>
    %309 = arith.addf %308, %307 : vector<16x1xf32>
    %310 = arith.divf %308, %309 : vector<16x1xf32>
    %cst_101 = arith.constant 0.000000e+00 : f32
    %311 = vector.broadcast %cst_101 : f32 to vector<16x1xf32>
    %312 = arith.select %299, %310, %311 : vector<16x1xi1>, vector<16x1xf32>
    %313 = vector.broadcast %312 : vector<16x1xf32> to vector<16x128xf32>
    %314 = arith.mulf %313, %297 : vector<16x128xf32>
    %cst_102 = arith.constant dense<0.000000e+00> : vector<128xf32>
    %315 = vector.multi_reduction <add>, %314, %cst_102 [0] : vector<16x128xf32> to vector<128xf32>
    %316 = arith.index_cast %c6_i32 : i32 to index
    %c0_103 = arith.constant 0 : index
    %317 = vector.load %arg6[%316, %c0_103] : memref<8x128xf32, #tpu.memory_space<vmem>>, vector<1x128xf32>
    %318 = vector.shape_cast %317 : vector<1x128xf32> to vector<128xf32>
    %319 = vector.shape_cast %315 : vector<128xf32> to vector<1x128xf32>
    tpu.vector_store %arg6[%316, %c0_103], %319 {strides = array<i32>} : memref<8x128xf32, #tpu.memory_space<vmem>>, vector<1x128xf32>,
    %cst_104 = arith.constant 0xFF800000 : f32
    %320 = vector.shape_cast %299 : vector<16x1xi1> to vector<16x1xi1>
    %321 = vector.broadcast %320 : vector<16x1xi1> to vector<16x128xi1>
    %322 = vector.broadcast %cst_104 : f32 to vector<16x128xf32>
    %323 = arith.select %321, %297, %322 : vector<16x128xi1>, vector<16x128xf32>
    %cst_105 = arith.constant dense<0xFF800000> : vector<128xf32>
    %324 = vector.multi_reduction <maximumf>, %323, %cst_105 [0] : vector<16x128xf32> to vector<128xf32>
    %325 = arith.index_cast %c6_i32 : i32 to index
    %c0_106 = arith.constant 0 : index
    %326 = vector.load %arg7[%325, %c0_106] : memref<8x128xf32, #tpu.memory_space<vmem>>, vector<1x128xf32>
    %327 = vector.shape_cast %326 : vector<1x128xf32> to vector<128xf32>
    %328 = vector.shape_cast %324 : vector<128xf32> to vector<1x128xf32>
    tpu.vector_store %arg7[%325, %c0_106], %328 {strides = array<i32>} : memref<8x128xf32, #tpu.memory_space<vmem>>, vector<1x128xf32>,
    %c7_i32 = arith.constant 7 : i32
    %c8_i32_107 = arith.constant 8 : i32
    %329 = arith.muli %arg0, %c8_i32_107 : i32
    %330 = arith.addi %329, %c7_i32 : i32
    %331 = arith.index_cast %330 : i32 to index
    %332 = memref.load %arg2[%331] : memref<16xi32, #tpu.memory_space<smem>>
    %333 = arith.index_cast %330 : i32 to index
    %334 = memref.load %arg1[%333] : memref<16xi32, #tpu.memory_space<smem>>
    %335 = arith.subi %334, %19 : i32
    %c64_i32_108 = arith.constant 64 : i32
    %336 = arith.minsi %335, %c64_i32_108 : i32
    %c0_i32_109 = arith.constant 0 : i32
    %c0_i32_110 = arith.constant 0 : i32
    %337 = tpu.memref_slice %arg8[%16, %c0_i32_109, %c0_i32_110] : memref<2x80x128xf32, #tpu.memory_space<vmem>> -> memref<1x80x128xf32, #tpu.memory_space<vmem>>
    %338 = tpu.memref_squeeze %337 : memref<1x80x128xf32, #tpu.memory_space<vmem>> -> memref<80x128xf32, #tpu.memory_space<vmem>>
    %339 = arith.index_cast %336 : i32 to index
    %c0_111 = arith.constant 0 : index
    %340 = vector.load %338[%339, %c0_111] : memref<80x128xf32, #tpu.memory_space<vmem>>, vector<16x128xf32>
    %341 = vector.broadcast %332 : i32 to vector<16x1xi32>
    %342 = arith.cmpi slt, %27, %341 : vector<16x1xi32>
    %343 = vector.broadcast %25 : vector<1x128xf32> to vector<16x128xf32>
    %344 = arith.mulf %340, %343 : vector<16x128xf32>
    %cst_112 = arith.constant dense<0.000000e+00> : vector<16xf32>
    %345 = vector.multi_reduction <add>, %344, %cst_112 [1] : vector<16x128xf32> to vector<16xf32>
    %346 = vector.shape_cast %345 : vector<16xf32> to vector<16x1xf32>
    %347 = vector.broadcast %26 : vector<1x1xf32> to vector<16x1xf32>
    %348 = arith.addf %346, %347 : vector<16x1xf32>
    %349 = arith.negf %348 : vector<16x1xf32>
    %350 = math.exp %349 : vector<16x1xf32>
    %cst_113 = arith.constant 1.000000e+00 : f32
    %351 = vector.broadcast %cst_113 : f32 to vector<16x1xf32>
    %352 = arith.addf %351, %350 : vector<16x1xf32>
    %353 = arith.divf %351, %352 : vector<16x1xf32>
    %cst_114 = arith.constant 0.000000e+00 : f32
    %354 = vector.broadcast %cst_114 : f32 to vector<16x1xf32>
    %355 = arith.select %342, %353, %354 : vector<16x1xi1>, vector<16x1xf32>
    %356 = vector.broadcast %355 : vector<16x1xf32> to vector<16x128xf32>
    %357 = arith.mulf %356, %340 : vector<16x128xf32>
    %cst_115 = arith.constant dense<0.000000e+00> : vector<128xf32>
    %358 = vector.multi_reduction <add>, %357, %cst_115 [0] : vector<16x128xf32> to vector<128xf32>
    %359 = arith.index_cast %c7_i32 : i32 to index
    %c0_116 = arith.constant 0 : index
    %360 = vector.load %arg6[%359, %c0_116] : memref<8x128xf32, #tpu.memory_space<vmem>>, vector<1x128xf32>
    %361 = vector.shape_cast %360 : vector<1x128xf32> to vector<128xf32>
    %362 = vector.shape_cast %358 : vector<128xf32> to vector<1x128xf32>
    tpu.vector_store %arg6[%359, %c0_116], %362 {strides = array<i32>} : memref<8x128xf32, #tpu.memory_space<vmem>>, vector<1x128xf32>,
    %cst_117 = arith.constant 0xFF800000 : f32
    %363 = vector.shape_cast %342 : vector<16x1xi1> to vector<16x1xi1>
    %364 = vector.broadcast %363 : vector<16x1xi1> to vector<16x128xi1>
    %365 = vector.broadcast %cst_117 : f32 to vector<16x128xf32>
    %366 = arith.select %364, %340, %365 : vector<16x128xi1>, vector<16x128xf32>
    %cst_118 = arith.constant dense<0xFF800000> : vector<128xf32>
    %367 = vector.multi_reduction <maximumf>, %366, %cst_118 [0] : vector<16x128xf32> to vector<128xf32>
    %368 = arith.index_cast %c7_i32 : i32 to index
    %c0_119 = arith.constant 0 : index
    %369 = vector.load %arg7[%368, %c0_119] : memref<8x128xf32, #tpu.memory_space<vmem>>, vector<1x128xf32>
    %370 = vector.shape_cast %369 : vector<1x128xf32> to vector<128xf32>
    %371 = vector.shape_cast %367 : vector<128xf32> to vector<1x128xf32>
    tpu.vector_store %arg7[%368, %c0_119], %371 {strides = array<i32>} : memref<8x128xf32, #tpu.memory_space<vmem>>, vector<1x128xf32>,
    %c8_i32_120 = arith.constant 8 : i32
    return
  }
  func.func @transform_1(%arg0: i32, %arg1: memref<16xi32, #tpu.memory_space<smem>>, %arg2: memref<16xi32, #tpu.memory_space<smem>>) -> (i32, i32) {
    %c0_i32 = arith.constant 0 : i32
    %c0_i32_0 = arith.constant 0 : i32
    %c0_i32_1 = arith.constant 0 : i32
    return %c0_i32, %c0_i32_0 : i32, i32
  }
  func.func @transform_2(%arg0: i32, %arg1: memref<16xi32, #tpu.memory_space<smem>>, %arg2: memref<16xi32, #tpu.memory_space<smem>>) -> (i32, i32) {
    %c0_i32 = arith.constant 0 : i32
    %c0_i32_0 = arith.constant 0 : i32
    %c0_i32_1 = arith.constant 0 : i32
    return %c0_i32, %c0_i32_0 : i32, i32
  }
  func.func @transform_3(%arg0: i32, %arg1: memref<16xi32, #tpu.memory_space<smem>>, %arg2: memref<16xi32, #tpu.memory_space<smem>>) -> (i32, i32) {
    %c0_i32 = arith.constant 0 : i32
    %c0_i32_0 = arith.constant 0 : i32
    return %arg0, %c0_i32 : i32, i32
  }
  func.func @transform_4(%arg0: i32, %arg1: memref<16xi32, #tpu.memory_space<smem>>, %arg2: memref<16xi32, #tpu.memory_space<smem>>) -> (i32, i32) {
    %c0_i32 = arith.constant 0 : i32
    %c0_i32_0 = arith.constant 0 : i32
    return %arg0, %c0_i32 : i32, i32
  }
}

</mosaic_0001>

<bundles_post_ra>
// kernel: readout_phase_forward.1
= control target key start
LH: loop header
LB: loop body
LE: loop exit
PB: predicated region body
PF: predicated region fallthrough
CT: control target
= control target key end

     0   :  { %s1618_s0 = inlined_call_operand.vmem [shape: s32[16], index: 0, kind: input, shape index: {}]   ;;  %s1619_s2 = inlined_call_operand.vmem [shape: f32[152,128], index: 2, kind: input, shape index: {}]   ;;  %s1620_s3 = inlined_call_operand.vmem [shape: f32[1,128], index: 3, kind: input, shape index: {}]   ;;  %s1621_s5 = inlined_call_operand.vmem [shape: f32[16,128], index: 5, kind: output, shape index: {0}]   ;;  %s1622_s6 = inlined_call_operand.vmem [shape: f32[16,128], index: 6, kind: output, shape index: {1}]   ;;  %s1623_s1 = inlined_call_operand.vmem [shape: s32[16], index: 1, kind: input, shape index: {}]   ;;  %s1624_s4 = inlined_call_operand.<no memory space> [shape: f32[1,1], index: 4, kind: input, shape index: {}]  }
   0x1   :  { %s12_s23 = sshll.u32 %s1618_s0, 4  ;;  %s16_s26 = sshll.u32 %s1623_s1, 4  ;;  %v20_v0 = vstv %s1624_s4  ;;  %s13_s23 = int_to_ptr.vmem [resolvable:$true] %s12_s23  ;;  %s17_s26 = int_to_ptr.vmem [resolvable:$true] %s16_s26 }
   0x2   :  { %21 = vst [vmem:[#allocation7] sm:$0x1] %v20_v0  ;;  %s1138_s29 = scalar_lea.vmem %s13_s23, 16  ;;  %p1143_p1 = scmp.lt.s32.totalorder %s13_s23, %s13_s23 }
   0x3   :  { %p1139_p0 = scmp.ne.s32.totalorder %s13_s23, %s1138_s29  ;;  %p1144_p2 = scmp.lt.s32.totalorder %s1138_s29, %s1138_s29 }
   0x5   :  { %p1145_p3 = por %p1144_p2, %p1143_p1 }
   0x7   :  { %p1146_p4 = pnand %p1145_p3, %p1139_p0 }
   0x9   :  { %1149 = shalt.err (!%p1146_p4)  }
   0xa   :  { %s1174_s30 = smov [#allocation5]   ;;  %s1150_s0 = scalar_lea.vmem %s17_s26, 16 }
   0xb   :  { %15 = dma.vmem_to_smem %s13_s23, 16, %s1174_s30, [#allocation4] }
   0xc   :  { %p1151_p5 = scmp.ne.s32.totalorder %s17_s26, %s1150_s0  ;;  %p1155_p6 = scmp.lt.s32.totalorder %s17_s26, %s17_s26 }
   0xd   :  { %p1156_p7 = scmp.lt.s32.totalorder %s1150_s0, %s1150_s0 }
   0xf   :  { %p1157_p8 = por %p1156_p7, %p1155_p6 }
  0x11   :  { %p1158_p9 = pnand %p1157_p8, %p1151_p5 }
  0x13   :  { %1161 = shalt.err (!%p1158_p9)  }
  0x14   :  { %s1175_s1 = smov [#allocation6]  }
  0x15   :  { %19 = dma.vmem_to_smem %s17_s26, 16, %s1175_s1, [#allocation4] }
  0x16   :  { %1166 = dma.done.wait [#allocation4], 32 }
  0x17   :  { %1167 = vsyncadd [#allocation4], 4294967264 }
  0x18   :  { %23 = sfence }
  0x19   :  { %s1221_s4 = smov 0  }
  0x1a LB: > { %s1227_s7 = sadd.s32 4294967295, %s1172_s4   ;;  %p1024_p10 = scmp.ge.s32.totalorder %s1172_s4, 1  ;;  %s1172_s4 = sphi %s1221_s4, %s29_s4  }
  0x1b   : > { %p145_p11 = scmp.lt.s32.totalorder %s1172_s4, 3 }
  0x1d   : > { %p146_p12 = pnand %p1024_p10, %p145_p11 }
  0x1e   : > { %p167_p13 = scmp.lt.s32.totalorder (!%p146_p12), %s1227_s7, 1  ;;  %p1027_p0 = scmp.ne.s32.totalorder (!%p146_p12), %s1227_s7, 0 }
  0x1f   : > { %149 = sbr.rel (%p146_p12) target bundleno = 460 (0x1cc), region = 28 }
  0x26   : > { %s168_s8 = scalar_select %p167_p13, %s1227_s7, 1 }
  0x27   : > { %178 = sbr.rel (%p1027_p0) target bundleno = 53 (0x35), region = 32  ;;  %s179_s16 = sld [smem:[#allocation5]] (!%p1027_p0) }
  0x28   : > { %s1025_s9 = sshll.u32 %s168_s8, 3 }
  0x29   : > { %s1236_s12 = scalar_lea.vmem %s1621_s5, %s1025_s9  ;;  %s1241_s15 = scalar_lea.vmem %s1622_s6, %s1025_s9 }
  0x2d   : > { %s180_s19 = scalar_lea.vmem (!%p1027_p0), %s1619_s2, %s179_s16 }
  0x2e   : > { %v213_v1 = vld [vmem:[%s180_s19] sm:$0xff]  ;;  %v215_v2 = vld [vmem:[%s180_s19 + $0x8] sm:$0xff]  ;;  %v217_v3 = vld [vmem:[%s180_s19 + $0x10] sm:$0xff] }
  0x2f   : > { %214 = vst [vmem:[#allocation2] sm:$0xff] %v213_v1  ;;  %216 = vst [vmem:[#allocation2 + $0x8] sm:$0xff] %v215_v2  ;;  %v219_v4 = vld [vmem:[%s180_s19 + $0x18] sm:$0xff]  ;;  %v221_v5 = vld [vmem:[%s180_s19 + $0x20] sm:$0xff] }
  0x30   : > { %218 = vst [vmem:[#allocation2 + $0x10] sm:$0xff] %v217_v3  ;;  %v223_v6 = vld [vmem:[%s180_s19 + $0x28] sm:$0xff]  ;;  %220 = vst [vmem:[#allocation2 + $0x18] sm:$0xff] %v219_v4  ;;  %v225_v7 = vld [vmem:[%s180_s19 + $0x30] sm:$0xff] }
  0x31   : > { %222 = vst [vmem:[#allocation2 + $0x20] sm:$0xff] %v221_v5  ;;  %224 = vst [vmem:[#allocation2 + $0x28] sm:$0xff] %v223_v6  ;;  %v227_v8 = vld [vmem:[%s180_s19 + $0x38] sm:$0xff]  ;;  %v229_v9 = vld [vmem:[%s180_s19 + $0x40] sm:$0xff] }
  0x32   : > { %226 = vst [vmem:[#allocation2 + $0x30] sm:$0xff] %v225_v7  ;;  %228 = vst [vmem:[#allocation2 + $0x38] sm:$0xff] %v227_v8  ;;  %v231_v10 = vld [vmem:[%s180_s19 + $0x48] sm:$0xff] }
  0x33   : > { %230 = vst [vmem:[#allocation2 + $0x40] sm:$0xff] %v229_v9  ;;  %232 = vst [vmem:[#allocation2 + $0x48] sm:$0xff] %v231_v10 }
  0x34   : > { %240 = vsyncadd [#allocation3], 1280 }
  0x35 PF: > { %s241_s20 = sadd.s32 1, %s1227_s7 }
  0x36   : > { %p1028_p1 = scmp.ge.s32.totalorder %s241_s20, 2 }
  0x37   : > { %p246_p2 = scmp.lt.s32.totalorder (!%p1028_p1), %s241_s20, 0  ;;  %s247_s21 = ssub.s32 (!%p1028_p1), 0, %s241_s20 }
  0x38   : > { %245 = sbr.rel (%p1028_p1) target bundleno = 76 (0x4c), region = 70  ;;  %s1029_s22 = smin.u32 (!%p1028_p1), %s247_s21, %s241_s20 }
  0x39   : > { %s1059_s23 = sshll.u32 (!%p1028_p1), %s1227_s7, 3  ;;  %s249_s24 = sand.u32 (!%p1028_p1), 1, %s1029_s22  }
  0x3a   : > { %s1060_s25 = sadd.s32 (!%p1028_p1), 8, %s1059_s23  ;;  %s250_s26 = ssub.s32 (!%p1028_p1), 0, %s249_s24 }
  0x3b   : > { %s259_s27 = sld [smem:[#allocation5 + %s1060_s25]] (!%p1028_p1) }
  0x3f   : > { %s1658_s26 = smov (!%p246_p2, %s250_s26), %s249_s24 }
  0x40   : > { %p1031_p3 = scmp.lt.s32.totalorder %s1658_s26, 0  ;;  %s256_s28 = sadd.s32 2, %s1658_s26 }
  0x41   : > { %s260_s0 = scalar_lea.vmem %s1619_s2, %s259_s27 }
  0x42   : > { %s1660_s28 = smov (!%p1031_p3, %s256_s28), %s1658_s26  ;;  %v296_v11 = vld [vmem:[%s260_s0] sm:$0xff]  ;;  %v298_v12 = vld [vmem:[%s260_s0 + $0x8] sm:$0xff]  ;;  %v300_v13 = vld [vmem:[%s260_s0 + $0x10] sm:$0xff] }
  0x43   : > { %s261_s1 = smul.u32 80, %s1660_s28  ;;  %v302_v14 = vld [vmem:[%s260_s0 + $0x18] sm:$0xff]  ;;  %v304_v15 = vld [vmem:[%s260_s0 + $0x20] sm:$0xff]  ;;  %v306_v16 = vld [vmem:[%s260_s0 + $0x28] sm:$0xff]  ;;  %s263_s9 = scalar_lea.sflag [#allocation3], %s1660_s28 }
  0x44   : > { %v308_v17 = vld [vmem:[%s260_s0 + $0x30] sm:$0xff]  ;;  %v310_v18 = vld [vmem:[%s260_s0 + $0x38] sm:$0xff]  ;;  %v312_v19 = vld [vmem:[%s260_s0 + $0x40] sm:$0xff] }
  0x45   : > { %s262_s8 = scalar_lea.vmem [#allocation2], %s261_s1  ;;  %v314_v20 = vld [vmem:[%s260_s0 + $0x48] sm:$0xff] }
  0x46   : > { %297 = vst [vmem:[%s262_s8] sm:$0xff] %v296_v11  ;;  %299 = vst [vmem:[%s262_s8 + $0x8] sm:$0xff] %v298_v12 }
  0x47   : > { %301 = vst [vmem:[%s262_s8 + $0x10] sm:$0xff] %v300_v13  ;;  %303 = vst [vmem:[%s262_s8 + $0x18] sm:$0xff] %v302_v14 }
  0x48   : > { %305 = vst [vmem:[%s262_s8 + $0x20] sm:$0xff] %v304_v15  ;;  %307 = vst [vmem:[%s262_s8 + $0x28] sm:$0xff] %v306_v16 }
  0x49   : > { %309 = vst [vmem:[%s262_s8 + $0x30] sm:$0xff] %v308_v17  ;;  %311 = vst [vmem:[%s262_s8 + $0x38] sm:$0xff] %v310_v18 }
  0x4a   : > { %313 = vst [vmem:[%s262_s8 + $0x40] sm:$0xff] %v312_v19  ;;  %315 = vst [vmem:[%s262_s8 + $0x48] sm:$0xff] %v314_v20 }
  0x4b   : > { %323 = vsyncadd %s263_s9, 1280 }
  0x4c PF: > { %p324_p4 = scmp.lt.s32.totalorder %s1227_s7, 0  ;;  %s325_s10 = ssub.s32 0, %s1227_s7 }
  0x4d   : > { %s1033_s11 = smin.u32 %s1227_s7, %s325_s10  ;;  %s1256_s13 = sshll.u32 %s1227_s7, 3 }
  0x4e   : > { %s327_s14 = sand.u32 1, %s1033_s11   ;;  %s1259_s16 = sld [smem:[#allocation5 + %s1256_s13]] }
  0x4f   : > { %s328_s17 = ssub.s32 0, %s327_s14 }
  0x50   : > { %s1662_s17 = smov (!%p324_p4, %s328_s17), %s327_s14 }
  0x51   : > { %p1035_p5 = scmp.lt.s32.totalorder %s1662_s17, 0  ;;  %s334_s18 = sadd.s32 2, %s1662_s17 }
  0x53   : > { %s1664_s18 = smov (!%p1035_p5, %s334_s18), %s1662_s17 }
  0x54   : > { %s338_s19 = smul.u32 80, %s1664_s18  ;;  %s340_s21 = scalar_lea.sflag [#allocation3], %s1664_s18 }
  0x56   : > { %s1261_s20 = scalar_lea.vmem [#allocation2], %s338_s19 }
  0x57   : > { %1168 = dma.done.wait %s340_s21, 1280 }
  0x58   : > { %1169 = vsyncadd %s340_s21, 4294966016  ;;  %s428_s7 = sadd.s32 1, %s1256_s13  ;;  %s496_s22 = sadd.s32 2, %s1256_s13  ;;  %v1294_v21 = vld [vmem:[%s1620_s3] ss:$0 sm:$0xff]  ;;  %v1176_v54 = vmov 0   ;;  %v346_v55 = vlaneseq }
  0x59   : > { %s430_s23 = sld [smem:[#allocation5 + %s428_s7]]  ;;  %s564_s26 = sadd.s32 3, %s1256_s13  ;;  %1073 = vset.pattern.permute.xlu1 %v1176_v54  ;;  %1072 = vset.pattern.permute.xlu0 %v1176_v54 }
  0x5a   : > { %s350_s24 = sld [smem:[#allocation5 + %s1256_s13]]  ;;  %s632_s28 = sadd.s32 4, %s1256_s13  ;;  %v1385_v56 = vshrl.u32 %v346_v55, 7 }
  0x5b   : > { %s498_s25 = sld [smem:[#allocation5 + %s496_s22]]  ;;  %s700_s30 = sadd.s32 5, %s1256_s13 }
  0x5c   : > { %s566_s27 = sld [smem:[#allocation5 + %s564_s26]]  ;;  %s768_s1 = sadd.s32 6, %s1256_s13  ;;  %v1388_v58 = vadd.s32 8, %v1385_v56 }
  0x5d   : > { %s634_s29 = sld [smem:[#allocation5 + %s632_s28]]  ;;  %s836_s9 = sadd.s32 7, %s1256_s13 }
  0x5e   : > { %s1279_s0 = sld [smem:[#allocation5 + %s700_s30]] }
  0x5f   : > { %s1284_s8 = sld [smem:[#allocation5 + %s768_s1]]  ;;  %s431_s10 = ssub.s32 %s430_s23, %s1259_s16 }
  0x60   : > { %s351_s11 = ssub.s32 %s350_s24, %s1259_s16  ;;  %p432_p6 = scmp.lt.s32.totalorder %s431_s10, 64 }
  0x61   : > { %p352_p7 = scmp.lt.s32.totalorder %s351_s11, 64  ;;  %s499_s14 = ssub.s32 %s498_s25, %s1259_s16 }
  0x62   : > { %s567_s17 = ssub.s32 %s566_s27, %s1259_s16  ;;  %s1666_s10 = smov (!%p432_p6, %s431_s10), 64 }
  0x63   : > { %s1668_s11 = smov (!%p352_p7, %s351_s11), 64  ;;  %s434_s21 = scalar_lea.vmem %s1261_s20, %s1666_s10 [#allocation2] }
  0x64   : > { %p500_p8 = scmp.lt.s32.totalorder %s499_s14, 64  ;;  %v1297_v22 = vld [vmem:[%s434_s21 + $0x8] sm:$0xff]  ;;  %s354_s23 = scalar_lea.vmem %s1261_s20, %s1668_s11 [#allocation2]  ;;  %v1319_v31 = vld [vmem:[%s434_s21] sm:$0xff] }
  0x65   : > { %p568_p9 = scmp.lt.s32.totalorder %s567_s17, 64  ;;  %v441_v23 = vmul.f32 %v1294_v21, %v1297_v22  ;;  %v1302_v24 = vld [vmem:[%s354_s23] sm:$0xff]  ;;  %v1304_v25 = vld [vmem:[%s354_s23 + $0x8] sm:$0xff]  ;;  %s635_s25 = ssub.s32 %s634_s29, %s1259_s16  ;;  %v440_v33 = vmul.f32 %v1294_v21, %v1319_v31 }
  0x66   : > { %s1670_s14 = smov (!%p500_p8, %s499_s14), 64  ;;  %v366_v26 = vmul.f32 %v1294_v21, %v1302_v24  ;;  %v367_v28 = vmul.f32 %v1294_v21, %v1304_v25  ;;  %p636_p10 = scmp.lt.s32.totalorder %s635_s25, 64 }
  0x67   : > { %s1672_s17 = smov (!%p568_p9, %s567_s17), 64  ;;  %444 = vadd.xlane.f32.xlu1 %v441_v23  ;;  %s502_s24 = scalar_lea.vmem %s1261_s20, %s1670_s14 [#allocation2] }
  0x68   : > { %368 = vadd.xlane.f32.xlu0 %v366_v26  ;;  %v1310_v27 = vld [vmem:[%s502_s24 + $0x8] sm:$0xff]  ;;  %s570_s27 = scalar_lea.vmem %s1261_s20, %s1672_s17 [#allocation2]  ;;  %s703_s10 = ssub.s32 %s1279_s0, %s1259_s16  ;;  %v1334_v35 = vld [vmem:[%s502_s24] sm:$0xff] }
  0x69   : > { %v509_v29 = vmul.f32 %v1294_v21, %v1310_v27  ;;  %v1317_v30 = vld [vmem:[%s570_s27 + $0x8] sm:$0xff]  ;;  %s771_s11 = ssub.s32 %s1284_s8, %s1259_s16  ;;  %s1674_s25 = smov (!%p636_p10, %s635_s25), 64  ;;  %v508_v37 = vmul.f32 %v1294_v21, %v1334_v35  ;;  %v1342_v39 = vld [vmem:[%s570_s27] sm:$0xff] }
  0x6a   : > { %v577_v32 = vmul.f32 %v1294_v21, %v1317_v30  ;;  %p704_p11 = scmp.lt.s32.totalorder %s703_s10, 64  ;;  %p772_p12 = scmp.lt.s32.totalorder %s771_s11, 64  ;;  %v576_v41 = vmul.f32 %v1294_v21, %v1342_v39 }
  0x6b   : > { %512 = vadd.xlane.f32.xlu1 %v509_v29  ;;  %s638_s29 = scalar_lea.vmem %s1261_s20, %s1674_s25 [#allocation2]  ;;  %s838_s14 = sld [smem:[#allocation5 + %s836_s9]] }
  0x6c   : > { %370 = vadd.xlane.f32.xlu0 %v367_v28  ;;  %v1332_v34 = vld [vmem:[%s638_s29] sm:$0xff]  ;;  %s1676_s10 = smov (!%p704_p11, %s703_s10), 64  ;;  %v1340_v38 = vld [vmem:[%s638_s29 + $0x8] sm:$0xff]  ;;  %s1678_s11 = smov (!%p772_p12, %s771_s11), 64 }
  0x6d   : > { %v644_v36 = vmul.f32 %v1294_v21, %v1332_v34  ;;  %s706_s0 = scalar_lea.vmem %s1261_s20, %s1676_s10 [#allocation2]  ;;  %v645_v40 = vmul.f32 %v1294_v21, %v1340_v38  ;;  %s774_s17 = scalar_lea.vmem %s1261_s20, %s1678_s11 [#allocation2] }
  0x6e   : > { %v1350_v42 = vld [vmem:[%s706_s0] sm:$0xff]  ;;  %v1353_v43 = vld [vmem:[%s706_s0 + $0x8] sm:$0xff]  ;;  %s429_s18 = sld [smem:[#allocation6 + %s428_s7]] }
  0x6f   : > { %580 = vadd.xlane.f32.xlu1 %v577_v32  ;;  %v712_v44 = vmul.f32 %v1294_v21, %v1350_v42  ;;  %v1357_v45 = vld [vmem:[%s774_s17] sm:$0xff]  ;;  %v713_v46 = vmul.f32 %v1294_v21, %v1353_v43  ;;  %v1363_v48 = vld [vmem:[%s774_s17 + $0x8] sm:$0xff]  ;;  %s497_s19 = sld [smem:[#allocation6 + %s496_s22]] }
  0x70   : > { %442 = vadd.xlane.f32.xlu0 %v440_v33  ;;  %v780_v47 = vmul.f32 %v1294_v21, %v1357_v45  ;;  %v781_v49 = vmul.f32 %v1294_v21, %v1363_v48  ;;  %s565_s21 = sld [smem:[#allocation6 + %s564_s26]] }
  0x71   : > { %s839_s8 = ssub.s32 %s838_s14, %s1259_s16  ;;  %s633_s23 = sld [smem:[#allocation6 + %s632_s28]] }
  0x72   : > { %p840_p13 = scmp.lt.s32.totalorder %s839_s8, 64  ;;  %s1392_s24 = sld [smem:[#allocation6 + %s700_s30]] }
  0x73   : > { %646 = vadd.xlane.f32.xlu1 %v644_v36  ;;  %s1428_s7 = sld [smem:[#allocation6 + %s768_s1]] }
  0x74   : > { %510 = vadd.xlane.f32.xlu0 %v508_v37  ;;  %s1680_s8 = smov (!%p840_p13, %s839_s8), 64  ;;  %v437_v59 = vstv %s429_s18  ;;  %s1480_s22 = sld [smem:[#allocation6 + %s836_s9]] }
  0x75   : > { %s842_s16 = scalar_lea.vmem %s1261_s20, %s1680_s8 [#allocation2]  ;;  %s349_s20 = sld [smem:[#allocation6 + %s1256_s13]]  ;;  %v505_v63 = vstv %s497_s19  ;;  %vm1408_vm2 = vcmp.lt.s32.totalorder %v1388_v58, %v437_v59  ;;  %vm1413_vm3 = vcmp.lt.s32.totalorder %v1385_v56, %v437_v59 }
  0x76   : > { %v1368_v50 = vld [vmem:[%s842_s16] sm:$0xff]  ;;  %v1372_v52 = vld [vmem:[%s842_s16 + $0x8] sm:$0xff]  ;;  %v573_v2 = vstv %s565_s21  ;;  %v487_v5 = vsel %vm1408_vm2, %v1297_v22, -inf  ;;  %v486_v6 = vsel %vm1413_vm3, %v1319_v31, -inf  ;;  %vm1431_vm4 = vcmp.lt.s32.totalorder %v1388_v58, %v505_v63 }
  0x77   : > { %648 = vadd.xlane.f32.xlu1 %v645_v40  ;;  %v848_v51 = vmul.f32 %v1294_v21, %v1368_v50  ;;  %v849_v53 = vmul.f32 %v1294_v21, %v1372_v52  ;;  %v641_v3 = vstv %s633_s23  ;;  %v488_v8 = vmax.f32 %v486_v6, %v487_v5 }
  0x78   : > { %578 = vadd.xlane.f32.xlu0 %v576_v41  ;;  %vm1436_vm5 = vcmp.lt.s32.totalorder %v1385_v56, %v505_v63  ;;  %vm1441_vm6 = vcmp.lt.s32.totalorder %v1388_v58, %v573_v2  ;;  %vm1446_vm7 = vcmp.lt.s32.totalorder %v1385_v56, %v573_v2  ;;  %vm1451_vm8 = vcmp.lt.s32.totalorder %v1385_v56, %v641_v3 }
  0x79   : > { %v709_v14 = vstv %s1392_s24  ;;  %v489_v16 = vrot.slane %v488_v8, 4  ;;  %vm1457_vm9 = vcmp.lt.s32.totalorder %v1388_v58, %v641_v3  ;;  %v555_v19 = vsel %vm1431_vm4, %v1310_v27, -inf }
  0x7a   : > { %vm1462_vm10 = vcmp.lt.s32.totalorder %v1385_v56, %v709_v14  ;;  %v554_v20 = vsel %vm1436_vm5, %v1334_v35, -inf  ;;  %v623_v21 = vsel %vm1441_vm6, %v1317_v30, -inf  ;;  %v622_v23 = vsel %vm1446_vm7, %v1342_v39, -inf }
  0x7b   : > { %714 = vadd.xlane.f32.xlu1 %v712_v44  ;;  %v357_v57 = vstv %s349_s20  ;;  %v490_v28 = vmax.f32 %v488_v8, %v489_v16  ;;  %v556_v29 = vmax.f32 %v554_v20, %v555_v19  ;;  %v624_v32 = vmax.f32 %v622_v23, %v623_v21 }
  0x7c   : > { %716 = vadd.xlane.f32.xlu0 %v713_v46  ;;  %vm1395_vm0 = vcmp.lt.s32.totalorder %v1385_v56, %v357_v57  ;;  %vm1403_vm1 = vcmp.lt.s32.totalorder %v1388_v58, %v357_v57  ;;  %v691_v33 = vsel %vm1457_vm9, %v1340_v38, -inf  ;;  %v690_v36 = vsel %vm1451_vm8, %v1332_v34, -inf }
  0x7d   : > { %v418_v61 = vsel %vm1395_vm0, %v1302_v24, -inf  ;;  %v419_v4 = vsel %vm1403_vm1, %v1304_v25, -inf  ;;  %v758_v37 = vsel %vm1462_vm10, %v1350_v42, -inf  ;;  %vm1492_vm11 = vcmp.lt.s32.totalorder %v1388_v58, %v709_v14 }
  0x7e   : > { %v420_v7 = vmax.f32 %v418_v61, %v419_v4  ;;  %v491_v44 = vrot.slane %v490_v28, 2  ;;  %v557_v46 = vrot.slane %v556_v29, 4  ;;  %v845_v2 = vstv %s1480_s22 }
  0x7f   : > { %782 = vadd.xlane.f32.xlu1 %v780_v47  ;;  %v625_v47 = vrot.slane %v624_v32, 4  ;;  %vm1507_vm13 = vcmp.lt.s32.totalorder %v1385_v56, %v845_v2  ;;  %vm1528_vm15 = vcmp.lt.s32.totalorder %v1388_v58, %v845_v2 }
  0x80   : > { %v421_v15 = vrot.slane %v420_v7, 4  ;;  %v492_v55 = vmax.f32 %v490_v28, %v491_v44  ;;  %v558_v57 = vmax.f32 %v556_v29, %v557_v46  ;;  %v894_v29 = vsel %vm1507_vm13, %v1368_v50, -inf }
  0x81   : > { %v626_v59 = vmax.f32 %v624_v32, %v625_v47  ;;  %v895_v47 = vsel %vm1528_vm15, %v1372_v52, -inf }
  0x82   : > { %v422_v26 = vmax.f32 %v420_v7, %v421_v15  ;;  %v493_v5 = vrot.slane %v492_v55, 1  ;;  %v559_v6 = vrot.slane %v558_v57, 2 }
  0x83   : > { %784 = vadd.xlane.f32.xlu1 %v781_v49  ;;  %v692_v49 = vmax.f32 %v690_v36, %v691_v33  ;;  %v627_v7 = vrot.slane %v626_v59, 2 }
  0x84   : > { %v423_v41 = vrot.slane %v422_v26, 2  ;;  %v494_v20 = vmax.f32 %v492_v55, %v493_v5  ;;  %v560_v21 = vmax.f32 %v558_v57, %v559_v6 }
  0x85   : > { %v693_v61 = vrot.slane %v692_v49, 4  ;;  %v628_v23 = vmax.f32 %v626_v59, %v627_v7 }
  0x86   : > { %v424_v54 = vmax.f32 %v422_v26, %v423_v41  ;;  %495 = vst [vmem:[%s1241_s15 + $0x1] sm:$0x1] %v494_v20  ;;  %v561_v32 = vrot.slane %v560_v21, 1 }
  0x87   : > { %850 = vadd.xlane.f32.xlu1 %v848_v51  ;;  %v759_v51 = vsel %vm1492_vm11, %v1353_v43, -inf  ;;  %v694_v8 = vmax.f32 %v692_v49, %v693_v61  ;;  %v629_v33 = vrot.slane %v628_v23, 1 }
  0x88   : > { %v760_v63 = vmax.f32 %v758_v37, %v759_v51  ;;  %v425_v4 = vrot.slane %v424_v54, 1  ;;  %v562_v49 = vmax.f32 %v560_v21, %v561_v32  ;;  %v1541_v21 = vld [vmem:[#allocation7] ss:$0 sm:$0xff] }
  0x89   : > { %v695_v26 = vrot.slane %v694_v8, 2  ;;  %v630_v51 = vmax.f32 %v628_v23, %v629_v33 }
  0x8a   : > { %v761_v14 = vrot.slane %v760_v63, 4  ;;  %v426_v19 = vmax.f32 %v424_v54, %v425_v4  ;;  %563 = vst [vmem:[%s1241_s15 + $0x2] sm:$0x1] %v562_v49 }
  0x8b   : > { %852 = vadd.xlane.f32.xlu1 %v849_v53  ;;  %v777_v53 = vstv %s1428_s7  ;;  %v696_v41 = vmax.f32 %v694_v8, %v695_v26  ;;  %631 = vst [vmem:[%s1241_s15 + $0x3] sm:$0x1] %v630_v51 }
  0x8c   : > { %vm1502_vm12 = vcmp.lt.s32.totalorder %v1385_v56, %v777_v53  ;;  %v762_v28 = vmax.f32 %v760_v63, %v761_v14  ;;  %vm1518_vm14 = vcmp.lt.s32.totalorder %v1388_v58, %v777_v53  ;;  %427 = vst [vmem:[%s1241_s15] sm:$0x1] %v426_v19  ;;  %v896_v53 = vmax.f32 %v894_v29, %v895_v47 }
  0x8d   : > { %v826_v16 = vsel %vm1502_vm12, %v1357_v45, -inf  ;;  %v827_v36 = vsel %vm1518_vm14, %v1363_v48, -inf  ;;  %v697_v54 = vrot.slane %v696_v41, 1 }
  0x8e   : > { %v763_v44 = vrot.slane %v762_v28, 2  ;;  %v828_v46 = vmax.f32 %v826_v16, %v827_v36  ;;  %v897_v58 = vrot.slane %v896_v53, 4 }
  0x8f   : > { %v698_v59 = vmax.f32 %v696_v41, %v697_v54 }
  0x90   : > { %v764_v55 = vmax.f32 %v762_v28, %v763_v44  ;;  %v829_v57 = vrot.slane %v828_v46, 4  ;;  %v898_v2 = vmax.f32 %v896_v53, %v897_v58 }
  0x91   : > { %699 = vst [vmem:[%s1241_s15 + $0x4] sm:$0x1] %v698_v59 }
  0x92   : > { %v765_v61 = vrot.slane %v764_v55, 1  ;;  %v830_v63 = vmax.f32 %v828_v46, %v829_v57  ;;  %v899_v6 = vrot.slane %v898_v2, 2 }
  0x94   : > { %v766_v4 = vmax.f32 %v764_v55, %v765_v61  ;;  %v831_v5 = vrot.slane %v830_v63, 2  ;;  %v900_v8 = vmax.f32 %v898_v2, %v899_v6 }
  0x96   : > { %767 = vst [vmem:[%s1241_s15 + $0x5] sm:$0x1] %v766_v4  ;;  %v832_v7 = vmax.f32 %v830_v63, %v831_v5  ;;  %v901_v16 = vrot.slane %v900_v8, 1 }
  0x98   : > { %v833_v14 = vrot.slane %v832_v7, 1  ;;  %v902_v20 = vmax.f32 %v900_v8, %v901_v16 }
  0x9a   : > { %v834_v19 = vmax.f32 %v832_v7, %v833_v14  ;;  %903 = vst [vmem:[%s1241_s15 + $0x7] sm:$0x1] %v902_v20 }
  0x9c   : > { %835 = vst [vmem:[%s1241_s15 + $0x6] sm:$0x1] %v834_v19 }
  0xf4   : > { %v445_v23 = vpop.xlane.xlu1 %444 }
  0xf5   : > { %v447_v26 = vadd.f32 %v1541_v21, %v445_v23  ;;  %v369_v28 = vpop.xlane.xlu0 %368 }
  0xf6   : > { %v378_v29 = vadd.f32 %v1541_v21, %v369_v28 }
  0xf7   : > { %v1042_v32 = vmul.f32 -1.442695, %v447_v26 }
  0xf8   : > { %v1039_v33 = vmul.f32 -1.442695, %v378_v29  ;;  %v513_v36 = vpop.xlane.xlu1 %512 }
  0xf9   : > { %1074 = vpow2.f32 %v1042_v32  ;;  %v515_v41 = vadd.f32 %v1541_v21, %v513_v36  ;;  %v371_v44 = vpop.xlane.xlu0 %370 }
  0xfa   : > { %1076 = vpow2.f32 %v1039_v33  ;;  %v379_v46 = vadd.f32 %v1541_v21, %v371_v44 }
  0xfb   : > { %v1044_v47 = vmul.f32 -1.442695, %v515_v41 }
  0xfc   : > { %v1040_v49 = vmul.f32 -1.442695, %v379_v46  ;;  %v581_v51 = vpop.xlane.xlu1 %580 }
  0xfd   : > { %v583_v53 = vadd.f32 %v1541_v21, %v581_v51  ;;  %v443_v54 = vpop.xlane.xlu0 %442 }
  0xfe   : > { %1078 = vpow2.f32 %v1040_v49  ;;  %v446_v55 = vadd.f32 %v1541_v21, %v443_v54 }
  0xff   : > { %v1046_v57 = vmul.f32 -1.442695, %v583_v53  ;;  %1080 = vpow2.f32 %v1044_v47 }
 0x100   : > { %v1041_v58 = vmul.f32 -1.442695, %v446_v55  ;;  %v647_v59 = vpop.xlane.xlu1 %646 }
 0x101   : > { %1082 = vpow2.f32 %v1046_v57  ;;  %v650_v61 = vadd.f32 %v1541_v21, %v647_v59  ;;  %v511_v63 = vpop.xlane.xlu0 %510 }
 0x102   : > { %1084 = vpow2.f32 %v1041_v58  ;;  %v514_v2 = vadd.f32 %v1541_v21, %v511_v63 }
 0x103   : > { %v1075_v4 = vpop.eup %1074  ;;  %v1047_v5 = vmul.f32 -1.442695, %v650_v61 }
 0x104   : > { %v1077_v6 = vpop.eup %1076  ;;  %v1043_v7 = vmul.f32 -1.442695, %v514_v2  ;;  %v649_v8 = vpop.xlane.xlu1 %648  ;;  %v455_v20 = vadd.f32 1.0, %v1075_v4 }
 0x105   : > { %v386_v14 = vadd.f32 1.0, %v1077_v6  ;;  %1086 = vpow2.f32 %v1047_v5  ;;  %v651_v16 = vadd.f32 %v1541_v21, %v649_v8  ;;  %v579_v19 = vpop.xlane.xlu0 %578 }
 0x106   : > { %v582_v23 = vadd.f32 %v1541_v21, %v579_v19 }
 0x107   : > { %1088 = vrcp.f32 %v386_v14  ;;  %v1048_v26 = vmul.f32 -1.442695, %v651_v16 }
 0x108   : > { %v1079_v28 = vpop.eup %1078  ;;  %1090 = vpow2.f32 %v1043_v7  ;;  %v1045_v29 = vmul.f32 -1.442695, %v582_v23  ;;  %v715_v32 = vpop.xlane.xlu1 %714 }
 0x109   : > { %v387_v33 = vadd.f32 1.0, %v1079_v28  ;;  %1092 = vpow2.f32 %v1048_v26  ;;  %v718_v36 = vadd.f32 %v1541_v21, %v715_v32  ;;  %v717_v41 = vpop.xlane.xlu0 %716  ;;  %v1081_v44 = vpop.eup %1080 }
 0x10a   : > { %1094 = vrcp.f32 %v455_v20  ;;  %v719_v46 = vadd.f32 %v1541_v21, %v717_v41  ;;  %v523_v55 = vadd.f32 1.0, %v1081_v44 }
 0x10b   : > { %v1083_v47 = vpop.eup %1082  ;;  %1096 = vrcp.f32 %v387_v33  ;;  %v1049_v49 = vmul.f32 -1.442695, %v718_v36 }
 0x10c   : > { %v1085_v51 = vpop.eup %1084  ;;  %1098 = vpow2.f32 %v1045_v29  ;;  %v783_v53 = vpop.xlane.xlu1 %782  ;;  %v1050_v54 = vmul.f32 -1.442695, %v719_v46  ;;  %v591_v61 = vadd.f32 1.0, %v1083_v47 }
 0x10d   : > { %v454_v57 = vadd.f32 1.0, %v1085_v51  ;;  %1100 = vpow2.f32 %v1049_v49  ;;  %v786_v58 = vadd.f32 %v1541_v21, %v783_v53 }
 0x10f   : > { %v1087_v59 = vpop.eup %1086  ;;  %1102 = vrcp.f32 %v454_v57  ;;  %v1051_v63 = vmul.f32 -1.442695, %v786_v58 }
 0x110   : > { %v785_v2 = vpop.xlane.xlu1 %784  ;;  %1104 = vpow2.f32 %v1050_v54  ;;  %v658_v7 = vadd.f32 1.0, %v1087_v59 }
 0x111   : > { %v1089_v4 = vpop.eup %1088  ;;  %1106 = vrcp.f32 %v523_v55  ;;  %v787_v5 = vadd.f32 %v1541_v21, %v785_v2 }
 0x112   : > { %v1091_v6 = vpop.eup %1090  ;;  %v392_v8 = vsel %vm1395_vm0, %v1089_v4, 0.0  ;;  %1108 = vrcp.f32 %v591_v61 }
 0x113   : > { %v1093_v14 = vpop.eup %1092  ;;  %v522_v16 = vadd.f32 1.0, %v1091_v6  ;;  %396 = vperm.xlu1 %1073, %v392_v8   ;;  %1110 = vpow2.f32 %v1051_v63  ;;  %v1052_v23 = vmul.f32 -1.442695, %v787_v5 }
 0x114   : > { %v1095_v19 = vpop.eup %1094  ;;  %v659_v20 = vadd.f32 1.0, %v1093_v14  ;;  %v851_v26 = vpop.xlane.xlu1 %850 }
 0x115   : > { %v1097_v28 = vpop.eup %1096  ;;  %1112 = vrcp.f32 %v522_v16  ;;  %v854_v29 = vadd.f32 %v1541_v21, %v851_v26  ;;  %v461_v53 = vsel %vm1408_vm2, %v1095_v19, 0.0 }
 0x116   : > { %v1099_v32 = vpop.eup %1098  ;;  %1114 = vrcp.f32 %v658_v7  ;;  %v393_v33 = vsel %vm1403_vm1, %v1097_v28, 0.0 }
 0x117   : > { %v1101_v60 = vpop.eup %1100  ;;  %1116 = vrcp.f32 %v659_v20  ;;  %v590_v36 = vadd.f32 1.0, %v1099_v32  ;;  %v1053_v41 = vmul.f32 -1.442695, %v854_v29  ;;  %401 = vperm.xlu1 %1073, %v393_v33  }
 0x118   : > { %v726_v44 = vadd.f32 1.0, %v1101_v60  ;;  %1118 = vpow2.f32 %v1052_v23  ;;  %v853_v46 = vpop.xlane.xlu1 %852 }
 0x119   : > { %v1103_v47 = vpop.eup %1102  ;;  %1120 = vrcp.f32 %v590_v36  ;;  %v855_v49 = vadd.f32 %v1541_v21, %v853_v46 }
 0x11a   : > { %v1105_v51 = vpop.eup %1104  ;;  %1122 = vrcp.f32 %v726_v44  ;;  %v460_v62 = vsel %vm1413_vm3, %v1103_v47, 0.0 }
 0x11b   : > { %v1107_v54 = vpop.eup %1106  ;;  %v727_v55 = vadd.f32 1.0, %v1105_v51  ;;  %1124 = vpow2.f32 %v1053_v41  ;;  %469 = vperm.xlu1 %1073, %v461_v53   ;;  %464 = vperm.xlu0 %1072, %v460_v62   ;;  %v1054_v57 = vmul.f32 -1.442695, %v855_v49 }
 0x11c   : > { %v1109_v58 = vpop.eup %1108  ;;  %v529_v21 = vsel %vm1431_vm4, %v1107_v54, 0.0 }
 0x11d   : > { %v1111_v59 = vpop.eup %1110  ;;  %1126 = vrcp.f32 %v727_v55  ;;  %v597_v5 = vsel %vm1441_vm6, %v1109_v58, 0.0 }
 0x11e   : > { %1128 = vpow2.f32 %v1054_v57  ;;  %v794_v2 = vadd.f32 1.0, %v1111_v59 }
 0x11f   : > { %v1113_v61 = vpop.eup %1112  ;;  %537 = vperm.xlu1 %1073, %v529_v21  }
 0x120   : > { %v1115_v0 = vpop.eup %1114  ;;  %v528_v1 = vsel %vm1436_vm5, %v1113_v61, 0.0  ;;  %1130 = vrcp.f32 %v794_v2 }
 0x121   : > { %v1117_v63 = vpop.eup %1116  ;;  %532 = vperm.xlu0 %1072, %v528_v1   ;;  %v664_v11 = vsel %vm1451_vm8, %v1115_v0, 0.0 }
 0x122   : > { %v1119_v4 = vpop.eup %1118  ;;  %v665_v8 = vsel %vm1457_vm9, %v1117_v63, 0.0 }
 0x123   : > { %v1121_v6 = vpop.eup %1120  ;;  %605 = vperm.xlu1 %1073, %v597_v5   ;;  %v795_v10 = vadd.f32 1.0, %v1119_v4 }
 0x124   : > { %v1123_v7 = vpop.eup %1122  ;;  %v596_v9 = vsel %vm1446_vm7, %v1121_v6, 0.0 }
 0x125   : > { %v1125_v14 = vpop.eup %1124  ;;  %600 = vperm.xlu0 %1072, %v596_v9   ;;  %v732_v20 = vsel %vm1462_vm10, %v1123_v7, 0.0 }
 0x126   : > { %v862_v16 = vadd.f32 1.0, %v1125_v14 }
 0x127   : > { %673 = vperm.xlu1 %1073, %v665_v8   ;;  %v1127_v19 = vpop.eup %1126 }
 0x128   : > { %1132 = vrcp.f32 %v862_v16  ;;  %v1129_v23 = vpop.eup %1128  ;;  %v733_v17 = vsel %vm1492_vm11, %v1127_v19, 0.0 }
 0x129   : > { %1134 = vrcp.f32 %v795_v10  ;;  %668 = vperm.xlu0 %1072, %v664_v11   ;;  %v863_v12 = vadd.f32 1.0, %v1129_v23 }
 0x12a   : > { %v1131_v26 = vpop.eup %1130 }
 0x12b   : > { %736 = vperm.xlu1 %1073, %v732_v20   ;;  %1136 = vrcp.f32 %v863_v12  ;;  %v800_v29 = vsel %vm1502_vm12, %v1131_v26, 0.0 }
 0x12f   : > { %741 = vperm.xlu1 %1073, %v733_v17  }
 0x132   : > { %v1133_v28 = vpop.eup %1132 }
 0x133   : > { %v1135_v13 = vpop.eup %1134  ;;  %v868_v18 = vsel %vm1507_vm13, %v1133_v28, 0.0  ;;  %804 = vperm.xlu1 %1073, %v800_v29  }
 0x134   : > { %872 = vperm.xlu0 %1072, %v868_v18   ;;  %v801_v33 = vsel %vm1518_vm14, %v1135_v13, 0.0 }
 0x135   : > { %v1137_v32 = vpop.eup %1136 }
 0x136   : > { %v869_v40 = vsel %vm1528_vm15, %v1137_v32, 0.0 }
 0x137   : > { %809 = vperm.xlu1 %1073, %v801_v33  }
 0x13b   : > { %877 = vperm.xlu1 %1073, %v869_v40  }
 0x192   : > { %v397_v60 = vpop.permute.xlu1 %396 }
 0x193   : > { %v404_v3 = vmul.f32 %v397_v60, %v1302_v24 }
 0x196   : > { %v402_v36 = vpop.permute.xlu1 %401 }
 0x197   : > { %v405_v41 = vmul.f32 %v402_v36, %v1304_v25 }
 0x199   : > { %v406_v44 = vadd.f32 %v405_v41, %v404_v3 }
 0x19a   : > { %v470_v15 = vpop.permute.xlu1 %469  ;;  %v465_v46 = vpop.permute.xlu0 %464 }
 0x19b   : > { %v407_v47 = vrot.slane %v406_v44, 4  ;;  %v473_v49 = vmul.f32 %v470_v15, %v1297_v22  ;;  %v472_v56 = vmul.f32 %v465_v46, %v1319_v31 }
 0x19d   : > { %v408_v51 = vadd.f32 %v407_v47, %v406_v44  ;;  %v474_v53 = vadd.f32 %v473_v49, %v472_v56 }
 0x19e   : > { %v538_v62 = vpop.permute.xlu1 %537 }
 0x19f   : > { %v409_v37 = vrot.slane %v408_v51, 2  ;;  %v475_v54 = vrot.slane %v474_v53, 4  ;;  %v541_v55 = vmul.f32 %v538_v62, %v1310_v27 }
 0x1a0   : > { %v533_v57 = vpop.permute.xlu0 %532 }
 0x1a1   : > { %v410_v24 = vadd.f32 %v409_v37, %v408_v51  ;;  %v476_v58 = vadd.f32 %v475_v54, %v474_v53  ;;  %v540_v25 = vmul.f32 %v533_v57, %v1334_v35 }
 0x1a2   : > { %v606_v59 = vpop.permute.xlu1 %605 }
 0x1a3   : > { %v411_v21 = vrot.slane %v410_v24, 1  ;;  %v477_v61 = vrot.slane %v476_v58, 2  ;;  %v542_v0 = vadd.f32 %v541_v55, %v540_v25  ;;  %v609_v22 = vmul.f32 %v606_v59, %v1317_v30 }
 0x1a4   : > { %v601_v31 = vpop.permute.xlu0 %600 }
 0x1a5   : > { %v412_v1 = vadd.f32 %v411_v21, %v410_v24  ;;  %v478_v63 = vadd.f32 %v477_v61, %v476_v58  ;;  %v543_v2 = vrot.slane %v542_v0, 4  ;;  %v608_v4 = vmul.f32 %v601_v31, %v1342_v39 }
 0x1a6   : > { %v674_v27 = vpop.permute.xlu1 %673 }
 0x1a7   : > { %413 = vst [vmem:[%s1236_s12] sm:$0x1] %v412_v1  ;;  %v479_v5 = vrot.slane %v478_v63, 1  ;;  %v544_v6 = vadd.f32 %v543_v2, %v542_v0  ;;  %v610_v7 = vadd.f32 %v609_v22, %v608_v4  ;;  %v677_v35 = vmul.f32 %v674_v27, %v1340_v38 }
 0x1a8   : > { %v669_v9 = vpop.permute.xlu0 %668 }
 0x1a9   : > { %v480_v8 = vadd.f32 %v479_v5, %v478_v63  ;;  %v545_v14 = vrot.slane %v544_v6, 2  ;;  %v611_v10 = vrot.slane %v610_v7, 4  ;;  %v676_v30 = vmul.f32 %v669_v9, %v1332_v34 }
 0x1aa   : > { %v737_v16 = vpop.permute.xlu1 %736 }
 0x1ab   : > { %481 = vst [vmem:[%s1236_s12 + $0x1] sm:$0x1] %v480_v8  ;;  %v546_v19 = vadd.f32 %v545_v14, %v544_v6  ;;  %v612_v11 = vadd.f32 %v611_v10, %v610_v7  ;;  %v678_v20 = vadd.f32 %v677_v35, %v676_v30  ;;  %v744_v17 = vmul.f32 %v737_v16, %v1350_v42 }
 0x1ad   : > { %v547_v39 = vrot.slane %v546_v19, 1  ;;  %v613_v23 = vrot.slane %v612_v11, 2  ;;  %v679_v12 = vrot.slane %v678_v20, 4 }
 0x1ae   : > { %v742_v26 = vpop.permute.xlu1 %741 }
 0x1af   : > { %v548_v38 = vadd.f32 %v547_v39, %v546_v19  ;;  %v614_v28 = vadd.f32 %v613_v23, %v612_v11  ;;  %v680_v29 = vadd.f32 %v679_v12, %v678_v20  ;;  %v745_v13 = vmul.f32 %v742_v26, %v1353_v43 }
 0x1b1   : > { %549 = vst [vmem:[%s1236_s12 + $0x2] sm:$0x1] %v548_v38  ;;  %v615_v18 = vrot.slane %v614_v28, 1  ;;  %v681_v34 = vrot.slane %v680_v29, 2  ;;  %v746_v32 = vadd.f32 %v745_v13, %v744_v17 }
 0x1b2   : > { %v805_v33 = vpop.permute.xlu1 %804 }
 0x1b3   : > { %v616_v40 = vadd.f32 %v615_v18, %v614_v28  ;;  %v682_v60 = vadd.f32 %v681_v34, %v680_v29  ;;  %v747_v36 = vrot.slane %v746_v32, 4  ;;  %v812_v46 = vmul.f32 %v805_v33, %v1357_v45  ;;  %v873_v47 = vpop.permute.xlu0 %872 }
 0x1b4   : > { %v880_v62 = vmul.f32 %v873_v47, %v1368_v50 }
 0x1b5   : > { %617 = vst [vmem:[%s1236_s12 + $0x3] sm:$0x1] %v616_v40  ;;  %v683_v3 = vrot.slane %v682_v60, 1  ;;  %v748_v41 = vadd.f32 %v747_v36, %v746_v32 }
 0x1b6   : > { %v810_v44 = vpop.permute.xlu1 %809 }
 0x1b7   : > { %v684_v42 = vadd.f32 %v683_v3, %v682_v60  ;;  %v749_v15 = vrot.slane %v748_v41, 2  ;;  %v813_v43 = vmul.f32 %v810_v44, %v1363_v48 }
 0x1b9   : > { %685 = vst [vmem:[%s1236_s12 + $0x4] sm:$0x1] %v684_v42  ;;  %v750_v49 = vadd.f32 %v749_v15, %v748_v41  ;;  %v814_v56 = vadd.f32 %v813_v43, %v812_v46 }
 0x1ba   : > { %v878_v51 = vpop.permute.xlu1 %877 }
 0x1bb   : > { %v751_v53 = vrot.slane %v750_v49, 1  ;;  %v815_v37 = vrot.slane %v814_v56, 4  ;;  %v881_v54 = vmul.f32 %v878_v51, %v1372_v52 }
 0x1bd   : > { %v752_v55 = vadd.f32 %v751_v53, %v750_v49  ;;  %v816_v57 = vadd.f32 %v815_v37, %v814_v56  ;;  %v882_v24 = vadd.f32 %v881_v54, %v880_v62 }
 0x1bf   : > { %753 = vst [vmem:[%s1236_s12 + $0x5] sm:$0x1] %v752_v55  ;;  %v817_v45 = vrot.slane %v816_v57, 2  ;;  %v883_v58 = vrot.slane %v882_v24, 4 }
 0x1c1   : > { %v818_v48 = vadd.f32 %v817_v45, %v816_v57  ;;  %v884_v25 = vadd.f32 %v883_v58, %v882_v24 }
 0x1c3   : > { %v819_v59 = vrot.slane %v818_v48, 1  ;;  %v885_v21 = vrot.slane %v884_v25, 2 }
 0x1c5   : > { %v820_v61 = vadd.f32 %v819_v59, %v818_v48  ;;  %v886_v0 = vadd.f32 %v885_v21, %v884_v25 }
 0x1c7   : > { %821 = vst [vmem:[%s1236_s12 + $0x6] sm:$0x1] %v820_v61  ;;  %v887_v22 = vrot.slane %v886_v0, 1 }
 0x1c9   : > { %v888_v31 = vadd.f32 %v887_v22, %v886_v0 }
 0x1cb   : > { %889 = vst [vmem:[%s1236_s12 + $0x7] sm:$0x1] %v888_v31 }
 0x1cc PF: > { %s29_s4 = sadd.s32 1, %s1172_s4  }
 0x1cd   : > { %p26_p0 = scmp.ge.s32.totalorder %s29_s4, 4  }
 0x1cf   :  { %28 = sbr.rel (!%p26_p0) target bundleno = 26 (0x1a), region = 174 }
 0x1d6   :  { %937 = vsyncmov [#allocation3] }
 0x1d9   :  { %s938_s15 = vpop.sfrf %937 }
 0x1da   :  { %p1057_p1 = scmp.ne.s32.totalorder %s938_s15, 0 }
 0x1dc   :  { %942 = shalt.err (%p1057_p1)  }
 0x1dd   :  { %944 = vsyncmov [#allocation3 + $0x1] }
 0x1e0   :  { %s945_s13 = vpop.sfrf %944 }
 0x1e1   :  { %p1058_p2 = scmp.ne.s32.totalorder %s945_s13, 0 }
 0x1e3   :  { %949 = shalt.err (%p1058_p2)  }

</bundles_post_ra>
